<compile_context>
chip_gen: v7x
topology: tpu7x:2x2x1
jax: 0.10.0
libtpu: 0.0.40
codegen_flags: <defaults>
</compile_context>

<pallas_src>
import functools

import jax
import jax.numpy as jnp
from jax import lax
from jax.experimental import pallas as pl
from jax.experimental.pallas import tpu as pltpu

LANE = 128  # channel padding target (lane width)


def _ceil_to(x, m):
    return ((x + m - 1) // m) * m


def _pad_last(a, target):
    c = a.shape[-1]
    if c == target:
        return a
    return jnp.pad(a, [(0, 0)] * (a.ndim - 1) + [(0, target - c)])


def _space_to_depth(x, s):
    """[N,H,W,C] -> [N,ceil(H/s),ceil(W/s),s*s*C]; channel group index = ry*s+rx."""
    n, h, w, c = x.shape
    hs, ws = -(-h // s), -(-w // s)
    x = jnp.pad(x, ((0, 0), (0, hs * s - h), (0, ws * s - w), (0, 0)))
    x = x.reshape(n, hs, s, ws, s, c).transpose(0, 1, 3, 2, 4, 5)
    return x.reshape(n, hs, ws, s * s * c)


# ----------------------------- Pallas kernels ------------------------------ #

def _conv_act_kernel(x_ref, w_ref, b_ref, o_ref, *, kq, act):
    """One image: o = act(conv_stride1(x, w) + b).  Taps accumulated in-kernel.

    x_ref: [1, Hs, Ws, Cs] bf16   w_ref: [kq*kq, Cs, Cout] bf16
    b_ref: [1, Cout] f32          o_ref: [1, Ho, Wo, Cout] bf16
    """
    _, ho, wo, cout = o_ref.shape
    acc = jnp.zeros((ho * wo, cout), jnp.float32)
    for t in range(kq * kq):
        qy, qx = t // kq, t % kq
        xt = x_ref[0, qy:qy + ho, qx:qx + wo, :].reshape(ho * wo, -1)
        acc = acc + jnp.dot(xt, w_ref[t], preferred_element_type=jnp.float32)
    acc = acc + b_ref[...]
    if act == "silu":
        # EUP reciprocal keeps the divide off the VPU; values here are O(1) so
        # exp(-acc) cannot overflow.
        acc = acc * pl.reciprocal(1.0 + jnp.exp(-acc), approx=True)
    o_ref[0] = acc.reshape(ho, wo, cout).astype(o_ref.dtype)


def _conv_res_relu_kernel(x_ref, w_ref, b_ref, r_ref, wsc_ref, o_ref, *, kq):
    """Fused BasicBlock tail: o = relu(conv(x, w) + r @ wsc + b).

    r is the (strided) block input; wsc is the folded 1x1 shortcut weight or the
    identity matrix (identity shortcut).  b already contains cv2_bias + sc_bias.
    """
    _, ho, wo, cout = o_ref.shape
    acc = jnp.zeros((ho * wo, cout), jnp.float32)
    for t in range(kq * kq):
        qy, qx = t // kq, t % kq
        xt = x_ref[0, qy:qy + ho, qx:qx + wo, :].reshape(ho * wo, -1)
        acc = acc + jnp.dot(xt, w_ref[t], preferred_element_type=jnp.float32)
    rt = r_ref[0].reshape(ho * wo, -1)
    acc = acc + jnp.dot(rt, wsc_ref[...], preferred_element_type=jnp.float32)
    acc = acc + b_ref[...]
    o_ref[0] = jnp.maximum(acc, 0.0).reshape(ho, wo, cout).astype(o_ref.dtype)


def _maxpool_kernel(x_ref, o_ref, *, cp, taps):
    """3x3/s2/p1 max pool of one image, on a space-to-depth'ed (-inf padded) input.

    x_ref: [1, Hs, Ws, 4*cp] bf16 (channel group g = ry*2+rx), o_ref: [1, Ho, Wo, cp].
    """
    _, ho, wo, _ = o_ref.shape
    m = None
    for (qy, qx, g) in taps:
        v = x_ref[0, qy:qy + ho, qx:qx + wo, g * cp:(g + 1) * cp]
        m = v if m is None else jnp.maximum(m, v)
    o_ref[0] = m.astype(o_ref.dtype)


# ------------------------------ Pallas wrappers ----------------------------- #

def _prep_conv(p, k, s, cin_pad, cout_pad):
    """Fold BN into the conv weight, pad channels, rearrange for stride-1 taps.

    Returns (wq [kq*kq, Cs, cout_pad] bf16, bias [1, cout_pad] f32, kq), where
    Cs = s*s*cin_pad matches the space-to-depth input layout when s > 1.
    """
    w = jnp.transpose(p["w"], (2, 3, 1, 0)) * p["scale"]        # OIHW -> HWIO * BN
    ci, co = w.shape[2], w.shape[3]
    w = jnp.pad(w, ((0, 0), (0, 0), (0, cin_pad - ci), (0, cout_pad - co)))
    b = jnp.pad(p["bias"], (0, cout_pad - co)).reshape(1, cout_pad).astype(jnp.float32)
    if s == 1:
        kq = k
        wq = w.reshape(k * k, cin_pad, cout_pad)
    else:
        kq = -(-k // s)
        w = jnp.pad(w, ((0, kq * s - k), (0, kq * s - k), (0, 0), (0, 0)))
        wq = (w.reshape(kq, s, kq, s, cin_pad, cout_pad)
               .transpose(0, 2, 1, 3, 4, 5)
               .reshape(kq * kq, s * s * cin_pad, cout_pad))
    return wq.astype(jnp.bfloat16), b, kq


def _conv_pallas(x, wq, b, kq, s, pad, ho, wo, act=None, res=None, wsc=None):
    """Run one fused conv (+BN [+SiLU] or [+shortcut+ReLU]) as a single pallas_call."""
    n = x.shape[0]
    cop = wq.shape[-1]
    xp = jnp.pad(x, ((0, 0), (pad, pad), (pad, pad), (0, 0)))
    if s > 1:
        xp = _space_to_depth(xp, s)                 # stride folded into channels
    hs, ws, cs = xp.shape[1], xp.shape[2], xp.shape[3]

    in_specs = [
        pl.BlockSpec((1, hs, ws, cs), lambda i: (i, 0, 0, 0)),      # one image
        pl.BlockSpec((kq * kq, cs, cop), lambda i: (0, 0, 0)),      # weight resident
        pl.BlockSpec((1, cop), lambda i: (0, 0)),                   # bias
    ]
    args = [xp, wq, b]
    if res is not None:
        crp = res.shape[-1]
        in_specs += [
            pl.BlockSpec((1, ho, wo, crp), lambda i: (i, 0, 0, 0)),
            pl.BlockSpec((crp, cop), lambda i: (0, 0)),
        ]
        args += [res, wsc]
        kern = functools.partial(_conv_res_relu_kernel, kq=kq)
    else:
        kern = functools.partial(_conv_act_kernel, kq=kq, act=act)

    return pl.pallas_call(
        kern,
        out_shape=jax.ShapeDtypeStruct((n, ho, wo, cop), jnp.bfloat16),
        grid=(n,),
        in_specs=in_specs,
        out_specs=pl.BlockSpec((1, ho, wo, cop), lambda i: (i, 0, 0, 0)),
        compiler_params=pltpu.CompilerParams(
            dimension_semantics=("parallel",),
            vmem_limit_bytes=48 * 1024 * 1024),
    )(*args)


def _conv_bn(x, p, k, s, pad, act=None):
    n, h, w, cp = x.shape
    cout_pad = _ceil_to(p["w"].shape[0], LANE)
    wq, b, kq = _prep_conv(p, k, s, cp, cout_pad)
    ho = (h + 2 * pad - k) // s + 1
    wo = (w + 2 * pad - k) // s + 1
    return _conv_pallas(x, wq, b, kq, s, pad, ho, wo, act=act)


def _basic_block(x, blk):
    """cv1 (conv+BN+SiLU) then cv2+shortcut+ReLU fused in one kernel."""
    _, h, w, cp = x.shape
    s = blk["stride"]
    cout_pad = _ceil_to(blk["cv1"]["w"].shape[0], LANE)

    y = _conv_bn(x, blk["cv1"], 3, s, 1, act="silu")
    ho, wo = y.shape[1], y.shape[2]

    if "sc" in blk:                                  # 1x1 conv+BN shortcut
        wsc, bsc, _ = _prep_conv(blk["sc"], 1, 1, cp, cout_pad)
        wsc = wsc.reshape(cp, cout_pad)
        res = x[:, 0:ho * s:s, 0:wo * s:s, :]        # stride-s sampling of the input
    else:                                            # identity shortcut
        wsc = jnp.eye(cp, dtype=jnp.bfloat16)
        bsc = jnp.zeros((1, cout_pad), jnp.float32)
        res = x

    w2, b2, kq2 = _prep_conv(blk["cv2"], 3, 1, cout_pad, cout_pad)
    return _conv_pallas(y, w2, b2 + bsc, kq2, 1, 1, ho, wo, res=res, wsc=wsc)


_POOL_TAPS = tuple((ky // 2, kx // 2, (ky % 2) * 2 + (kx % 2))
                   for ky in range(3) for kx in range(3))


def _maxpool_3x3_s2_p1(x):
    n, h, w, cp = x.shape
    po = (h + 2 - 3) // 2 + 1
    qo = (w + 2 - 3) // 2 + 1
    xp = jnp.pad(x, ((0, 0), (1, 1), (1, 1), (0, 0)),
                 constant_values=float("-inf"))
    xs = _space_to_depth(xp, 2)                      # [N, Hs, Ws, 4*cp]
    hs, ws = xs.shape[1], xs.shape[2]
    return pl.pallas_call(
        functools.partial(_maxpool_kernel, cp=cp, taps=_POOL_TAPS),
        out_shape=jax.ShapeDtypeStruct((n, po, qo, cp), x.dtype),
        grid=(n,),
        in_specs=[pl.BlockSpec((1, hs, ws, 4 * cp), lambda i: (i, 0, 0, 0))],
        out_specs=pl.BlockSpec((1, po, qo, cp), lambda i: (i, 0, 0, 0)),
        compiler_params=pltpu.CompilerParams(dimension_semantics=("parallel",)),
    )(xs)


# --------------------------- parameters (synthetic) ------------------------- #

def init_conv(key, cin, cout, k):
    """Deterministic Conv (conv + BN) params; BN folded into (scale, bias)."""
    k1, k2, k3, k4, k5 = jax.random.split(key, 5)
    w = jax.random.normal(k1, (cout, cin, k, k), jnp.float32) * 0.1      # OIHW
    gamma = jax.random.uniform(k2, (cout,), minval=0.5, maxval=1.5)
    beta = jax.random.normal(k3, (cout,)) * 0.1
    mean = jax.random.normal(k4, (cout,)) * 0.1
    var = jax.random.uniform(k5, (cout,), minval=0.5, maxval=1.5)
    scale = gamma / jnp.sqrt(var + 1e-5)
    bias = beta - mean * scale
    return {"w": w, "scale": scale, "bias": bias}


def init_resnet_layer(key, c1, c2, s=1, is_first=False, n=1):
    params = {"is_first": is_first}
    keys = jax.random.split(key, 3 * max(n, 1) + 1)
    if is_first:
        params["conv"] = init_conv(keys[0], c1, c2, 7)
    else:
        blocks = []
        kidx = 0
        for b in range(n):
            cin = c1 if b == 0 else c2
            stride = s if b == 0 else 1
            blk = {
                "stride": stride,
                "cv1": init_conv(keys[kidx], cin, c2, 3),
                "cv2": init_conv(keys[kidx + 1], c2, c2, 3),
            }
            if stride != 1 or cin != c2:
                blk["sc"] = init_conv(keys[kidx + 2], cin, c2, 1)
            kidx += 3
            blocks.append(blk)
        params["blocks"] = blocks
    return params


# ------------------------------- forward pass ------------------------------- #

def resnet_layer_basic(x_nchw, params):
    """Equivalent of ResNetLayer_Basic.forward (NCHW f32 in / NCHW f32 out)."""
    x = jnp.transpose(x_nchw, (0, 2, 3, 1))                      # NCHW -> NHWC
    cin_pad = _ceil_to(x.shape[-1], LANE)
    x = _pad_last(x, cin_pad).astype(jnp.bfloat16)               # lane-dense bf16
    if params["is_first"]:
        c2 = params["conv"]["w"].shape[0]
        y = _conv_bn(x, params["conv"], 7, 2, 3, act="silu")     # 7x7/s2 + BN + SiLU
        out = _maxpool_3x3_s2_p1(y)                              # MaxPool2d(3,2,1)
    else:
        c2 = params["blocks"][-1]["cv2"]["w"].shape[0]
        for blk in params["blocks"]:
            x = _basic_block(x, blk)
        out = x
    out = out[..., :c2].astype(jnp.float32)                      # drop pad channels
    return jnp.transpose(out, (0, 3, 1, 2))                      # NHWC -> NCHW


# ------------------------------ pure-JAX reference --------------------------- #

def _ref_conv(x_nhwc, p, k, s, pad):
    w = jnp.transpose(p["w"], (2, 3, 1, 0))  # OIHW -> HWIO
    y = lax.conv_general_dilated(x_nhwc, w, (s, s), ((pad, pad), (pad, pad)),
                                 dimension_numbers=("NHWC", "HWIO", "NHWC"))
    return y * p["scale"] + p["bias"]


def ref_resnet_layer(x_nchw, params):
    x = jnp.transpose(x_nchw, (0, 2, 3, 1))
    silu = lambda v: v * jax.nn.sigmoid(v)
    if params["is_first"]:
        x = silu(_ref_conv(x, params["conv"], 7, 2, 3))
        x = lax.reduce_window(x, -jnp.inf, lax.max, (1, 3, 3, 1), (1, 2, 2, 1),
                              ((0, 0), (1, 1), (1, 1), (0, 0)))
    else:
        for blk in params["blocks"]:
            s = blk["stride"]
            y = silu(_ref_conv(x, blk["cv1"], 3, s, 1))
            y = _ref_conv(y, blk["cv2"], 3, 1, 1)
            sc = _ref_conv(x, blk["sc"], 1, s, 0) if "sc" in blk else x
            x = jnp.maximum(y + sc, 0.0)
    return jnp.transpose(x, (0, 3, 1, 2))


# ----------------------------------- main ----------------------------------- #

if __name__ == "__main__":
    key = jax.random.PRNGKey(0)
    kx, kp1, kp2 = jax.random.split(key, 3)
    x = jax.random.normal(kx, (2, 4, 16, 16), jnp.float32)  # NCHW, like PyTorch

    # Non-first ResNet layer: n=2 BasicBlocks, first with stride 2 (conv shortcut,
    # then identity shortcut).  bf16 MXU operands -> compare with a bf16-appropriate
    # tolerance against the f32 reference.
    params = init_resnet_layer(kp1, c1=4, c2=8, s=2, is_first=False, n=2)
    out = jax.block_until_ready(resnet_layer_basic(x, params))
    ref = ref_resnet_layer(x, params)
    assert out.shape == (2, 8, 8, 8), out.shape
    assert jnp.allclose(out, ref, atol=6e-2, rtol=6e-2), \
        float(jnp.max(jnp.abs(out - ref)))

    # is_first=True path: 7x7 stride-2 conv + BN + SiLU, then MaxPool2d(3, 2, 1).
    params_f = init_resnet_layer(kp2, c1=4, c2=8, is_first=True)
    out_f = jax.block_until_ready(resnet_layer_basic(x, params_f))
    ref_f = ref_resnet_layer(x, params_f)
    assert out_f.shape == (2, 8, 4, 4), out_f.shape
    assert jnp.allclose(out_f, ref_f, atol=6e-2, rtol=6e-2), \
        float(jnp.max(jnp.abs(out_f - ref_f)))

    print("KERNEL_OK")
</pallas_src>

<mosaic_0001>
module attributes {stable_mosaic.version = 11 : i64} {
  func.func @_conv_act_kernel(%arg0: i32, %arg1: memref<1x9x9x512xbf16, #tpu.memory_space<vmem>>, %arg2: memref<4x512x128xbf16, #tpu.memory_space<vmem>>, %arg3: memref<1x128xf32, #tpu.memory_space<vmem>>, %arg4: memref<1x8x8x128xbf16, #tpu.memory_space<vmem>>) attributes {dimension_semantics = [#tpu.dimension_semantics<parallel>], iteration_bounds = array<i64: 2>, scalar_prefetch = 0 : i64, scratch_operands = 0 : i64, tpu.core_type = #tpu.core_type<tc>, window_params = [{transform_indices = @transform_0, window_bounds = array<i64: 1, 9, 9, 512>}, {pipeline_mode = #tpu.pipeline_mode<synchronous>, transform_indices = @transform_1, window_bounds = array<i64: 4, 512, 128>}, {pipeline_mode = #tpu.pipeline_mode<synchronous>, transform_indices = @transform_2, window_bounds = array<i64: 1, 128>}, {transform_indices = @transform_3, window_bounds = array<i64: 1, 8, 8, 128>}]} {
    %cst = arith.constant 0.000000e+00 : f32
    %0 = vector.broadcast %cst : f32 to vector<64x128xf32>
    %c0 = arith.constant 0 : index
    %c0_0 = arith.constant 0 : index
    %c0_1 = arith.constant 0 : index
    %c0_2 = arith.constant 0 : index
    %1 = vector.load %arg1[%c0, %c0_0, %c0_1, %c0_2] : memref<1x9x9x512xbf16, #tpu.memory_space<vmem>>, vector<1x8x8x512xbf16>
    %2 = vector.shape_cast %1 : vector<1x8x8x512xbf16> to vector<8x8x512xbf16>
    %3 = vector.shape_cast %2 : vector<8x8x512xbf16> to vector<64x512xbf16>
    %c0_3 = arith.constant 0 : index
    %c0_4 = arith.constant 0 : index
    %c0_5 = arith.constant 0 : index
    %4 = vector.load %arg2[%c0_3, %c0_4, %c0_5] : memref<4x512x128xbf16, #tpu.memory_space<vmem>>, vector<1x512x128xbf16>
    %5 = vector.shape_cast %4 : vector<1x512x128xbf16> to vector<512x128xbf16>
    %cst_6 = arith.constant dense<0.000000e+00> : vector<64x128xf32>
    %6 = tpu.matmul %3, %5, %cst_6 {dimension_numbers = #tpu.dot_dimension_numbers<[1], [0], [0], [1], [0, 0, 1, 1], [], []>} : vector<64x512xbf16>, vector<512x128xbf16>, vector<64x128xf32> -> vector<64x128xf32>
    %7 = arith.addf %0, %6 : vector<64x128xf32>
    %c0_7 = arith.constant 0 : index
    %c0_8 = arith.constant 0 : index
    %c1 = arith.constant 1 : index
    %c0_9 = arith.constant 0 : index
    %8 = vector.load %arg1[%c0_7, %c0_8, %c1, %c0_9] : memref<1x9x9x512xbf16, #tpu.memory_space<vmem>>, vector<1x8x8x512xbf16>
    %9 = vector.shape_cast %8 : vector<1x8x8x512xbf16> to vector<8x8x512xbf16>
    %10 = vector.shape_cast %9 : vector<8x8x512xbf16> to vector<64x512xbf16>
    %c1_10 = arith.constant 1 : index
    %c0_11 = arith.constant 0 : index
    %c0_12 = arith.constant 0 : index
    %11 = vector.load %arg2[%c1_10, %c0_11, %c0_12] : memref<4x512x128xbf16, #tpu.memory_space<vmem>>, vector<1x512x128xbf16>
    %12 = vector.shape_cast %11 : vector<1x512x128xbf16> to vector<512x128xbf16>
    %cst_13 = arith.constant dense<0.000000e+00> : vector<64x128xf32>
    %13 = tpu.matmul %10, %12, %cst_13 {dimension_numbers = #tpu.dot_dimension_numbers<[1], [0], [0], [1], [0, 0, 1, 1], [], []>} : vector<64x512xbf16>, vector<512x128xbf16>, vector<64x128xf32> -> vector<64x128xf32>
    %14 = arith.addf %7, %13 : vector<64x128xf32>
    %c0_14 = arith.constant 0 : index
    %c1_15 = arith.constant 1 : index
    %c0_16 = arith.constant 0 : index
    %c0_17 = arith.constant 0 : index
    %15 = vector.load %arg1[%c0_14, %c1_15, %c0_16, %c0_17] : memref<1x9x9x512xbf16, #tpu.memory_space<vmem>>, vector<1x8x8x512xbf16>
    %16 = vector.shape_cast %15 : vector<1x8x8x512xbf16> to vector<8x8x512xbf16>
    %17 = vector.shape_cast %16 : vector<8x8x512xbf16> to vector<64x512xbf16>
    %c2 = arith.constant 2 : index
    %c0_18 = arith.constant 0 : index
    %c0_19 = arith.constant 0 : index
    %18 = vector.load %arg2[%c2, %c0_18, %c0_19] : memref<4x512x128xbf16, #tpu.memory_space<vmem>>, vector<1x512x128xbf16>
    %19 = vector.shape_cast %18 : vector<1x512x128xbf16> to vector<512x128xbf16>
    %cst_20 = arith.constant dense<0.000000e+00> : vector<64x128xf32>
    %20 = tpu.matmul %17, %19, %cst_20 {dimension_numbers = #tpu.dot_dimension_numbers<[1], [0], [0], [1], [0, 0, 1, 1], [], []>} : vector<64x512xbf16>, vector<512x128xbf16>, vector<64x128xf32> -> vector<64x128xf32>
    %21 = arith.addf %14, %20 : vector<64x128xf32>
    %c0_21 = arith.constant 0 : index
    %c1_22 = arith.constant 1 : index
    %c1_23 = arith.constant 1 : index
    %c0_24 = arith.constant 0 : index
    %22 = vector.load %arg1[%c0_21, %c1_22, %c1_23, %c0_24] : memref<1x9x9x512xbf16, #tpu.memory_space<vmem>>, vector<1x8x8x512xbf16>
    %23 = vector.shape_cast %22 : vector<1x8x8x512xbf16> to vector<8x8x512xbf16>
    %24 = vector.shape_cast %23 : vector<8x8x512xbf16> to vector<64x512xbf16>
    %c3 = arith.constant 3 : index
    %c0_25 = arith.constant 0 : index
    %c0_26 = arith.constant 0 : index
    %25 = vector.load %arg2[%c3, %c0_25, %c0_26] : memref<4x512x128xbf16, #tpu.memory_space<vmem>>, vector<1x512x128xbf16>
    %26 = vector.shape_cast %25 : vector<1x512x128xbf16> to vector<512x128xbf16>
    %cst_27 = arith.constant dense<0.000000e+00> : vector<64x128xf32>
    %27 = tpu.matmul %24, %26, %cst_27 {dimension_numbers = #tpu.dot_dimension_numbers<[1], [0], [0], [1], [0, 0, 1, 1], [], []>} : vector<64x512xbf16>, vector<512x128xbf16>, vector<64x128xf32> -> vector<64x128xf32>
    %28 = arith.addf %21, %27 : vector<64x128xf32>
    %c0_28 = arith.constant 0 : index
    %c0_29 = arith.constant 0 : index
    %29 = vector.load %arg3[%c0_28, %c0_29] : memref<1x128xf32, #tpu.memory_space<vmem>>, vector<1x128xf32>
    %30 = vector.broadcast %29 : vector<1x128xf32> to vector<64x128xf32>
    %31 = arith.addf %28, %30 : vector<64x128xf32>
    %cst_30 = arith.constant 0.000000e+00 : f32
    %32 = vector.broadcast %cst_30 : f32 to vector<64x128xf32>
    %33 = arith.subf %32, %31 : vector<64x128xf32>
    %34 = math.exp %33 : vector<64x128xf32>
    %cst_31 = arith.constant 1.000000e+00 : f32
    %35 = vector.broadcast %cst_31 : f32 to vector<64x128xf32>
    %36 = arith.addf %35, %34 : vector<64x128xf32>
    %37 = tpu.reciprocal %36 {approx = true} : vector<64x128xf32> -> vector<64x128xf32>
    %38 = arith.mulf %31, %37 : vector<64x128xf32>
    %39 = vector.shape_cast %38 : vector<64x128xf32> to vector<8x8x128xf32>
    %40 = arith.truncf %39 : vector<8x8x128xf32> to vector<8x8x128xbf16>
    %c0_32 = arith.constant 0 : index
    %c0_33 = arith.constant 0 : index
    %c0_34 = arith.constant 0 : index
    %c0_35 = arith.constant 0 : index
    %41 = vector.load %arg4[%c0_32, %c0_33, %c0_34, %c0_35] : memref<1x8x8x128xbf16, #tpu.memory_space<vmem>>, vector<1x8x8x128xbf16>
    %42 = vector.shape_cast %41 : vector<1x8x8x128xbf16> to vector<8x8x128xbf16>
    %43 = vector.shape_cast %40 : vector<8x8x128xbf16> to vector<1x8x8x128xbf16>
    tpu.vector_store %arg4[%c0_32, %c0_33, %c0_34, %c0_35], %43 {strides = array<i32>} : memref<1x8x8x128xbf16, #tpu.memory_space<vmem>>, vector<1x8x8x128xbf16>,
    return
  }
  func.func @transform_0(%arg0: i32) -> (i32, i32, i32, i32) {
    %c0_i32 = arith.constant 0 : i32
    %c0_i32_0 = arith.constant 0 : i32
    %c0_i32_1 = arith.constant 0 : i32
    %c0_i32_2 = arith.constant 0 : i32
    return %arg0, %c0_i32, %c0_i32_0, %c0_i32_1 : i32, i32, i32, i32
  }
  func.func @transform_1(%arg0: i32) -> (i32, i32, i32) {
    %c0_i32 = arith.constant 0 : i32
    %c0_i32_0 = arith.constant 0 : i32
    %c0_i32_1 = arith.constant 0 : i32
    %c0_i32_2 = arith.constant 0 : i32
    return %c0_i32, %c0_i32_0, %c0_i32_1 : i32, i32, i32
  }
  func.func @transform_2(%arg0: i32) -> (i32, i32) {
    %c0_i32 = arith.constant 0 : i32
    %c0_i32_0 = arith.constant 0 : i32
    %c0_i32_1 = arith.constant 0 : i32
    return %c0_i32, %c0_i32_0 : i32, i32
  }
  func.func @transform_3(%arg0: i32) -> (i32, i32, i32, i32) {
    %c0_i32 = arith.constant 0 : i32
    %c0_i32_0 = arith.constant 0 : i32
    %c0_i32_1 = arith.constant 0 : i32
    %c0_i32_2 = arith.constant 0 : i32
    return %arg0, %c0_i32, %c0_i32_0, %c0_i32_1 : i32, i32, i32, i32
  }
}

</mosaic_0001>

<bundles_post_ra>
// kernel: tpu_custom_call.1
= control target key start
LH: loop header
LB: loop body
LE: loop exit
PB: predicated region body
PF: predicated region fallthrough
CT: control target
= control target key end

     0   :  { %8 = vsyncpa [#allocation3], 0  ;;  %s4192_s0 = inlined_call_operand.vmem [shape: bf16[2,9,9,512], index: 0, kind: input, shape index: {}]   ;;  %s4193_s1 = inlined_call_operand.hbm [shape: bf16[4,512,128], index: 1, kind: input, shape index: {}]   ;;  %s4194_s2 = inlined_call_operand.vmem [shape: f32[1,128], index: 2, kind: input, shape index: {}]   ;;  %s4195_s3 = inlined_call_operand.hbm [shape: bf16[2,8,8,128], index: 3, kind: output, shape index: {}]  }
   0x1   :  { %9 = vsyncpa [#allocation4], 0 }
   0x2   :  { %11 = vsyncpa [#allocation4 + $0x1], 0  ;;  %s3670_s12 = smov 0   ;;  %s3672_s13 = smov 0  }
   0x3   :  { %s3674_s14 = smov 0   ;;  %s3676_s15 = smov 0  }
   0x4 LB: > { %s3691_s16 = sadd.s32 4294967295, %s3642_s15   ;;  %s2735_s17 = sadd.s32 4294967294, %s3642_s15   ;;  %s3642_s15 = sphi %s3676_s15, %s4213_s15   ;;  %s3638_s14 = sphi %s3674_s14, %s4212_s14   ;;  %s3634_s13 = sphi %s3672_s13, %s4211_s13   ;;  %s3630_s12 = sphi %s3670_s12, %s4210_s12  }
   0x5   : > { %s3695_s18 = sadd.s32 1, %s3642_s15   ;;  %s92_s19 = sadd.s32 1, %s3638_s14 }
   0x6   : > { %s89_s20 = ssub.s32 %s3642_s15, %s3695_s18  ;;  %p102_p0 = scmp.ne.s32.totalorder %s3638_s14, %s3634_s13 }
   0x7   : > { %p90_p1 = scmp.eq.s32.totalorder %s89_s20, 0  ;;  %p103_p2 = scmp.eq.s32.totalorder %s3691_s16, 1 }
   0x8   : > { %p108_p3 = scmp.ne.s32.totalorder %s3634_s13, %s3630_s12  ;;  %p109_p4 = scmp.eq.s32.totalorder %s2735_s17, 1 }
   0x9   : > { %s3706_s21 = scalar_select %p90_p1, %s3638_s14, %s92_s19  }
   0xa   : > { %p3708_p5 = por %p103_p2, %p102_p0  ;;  %p3712_p6 = por %p109_p4, %p108_p3 }
   0xb   : > { %p2736_p7 = scmp.ge.s32.totalorder %s3642_s15, 1  ;;  %p116_p8 = scmp.lt.s32.totalorder %s3642_s15, 3 }
   0xc   : > { %s4199_s22 = scalar_select %p3708_p5, 1, 0 }
   0xd   : > { %s4200_s23 = scalar_select %p3712_p6, 1, 0 }
   0xe   : > { %p4196_p9 = scmp.eq.s32.totalorder %s3691_s16, 0  ;;  %p3719_p10 = pnand %p2736_p7, %p116_p8 }
   0xf   : > { %s3644_s25 = smov [#allocation2]   ;;  %s3548_s30 = scalar_lea.hbm %s4193_s1, 16384 }
  0x10   : > { %s4201_s24 = scalar_select %p3719_p10, 1, 0 }
  0x11   : > { %s128_s26 = sshll.u32 %s3644_s25, 4  ;;  %p3340_p11 = pneg %p3719_p10  ;;  %s129_s26 = int_to_ptr.vmem [resolvable:$true] %s128_s26 }
  0x12   : > { %p3549_p13 = scmp.ne.s32.totalorder %s4193_s1, %s3548_s30  ;;  %p3555_p3 = scmp.lt.u32.totalorder %s3548_s30, %s4193_s1 }
  0x13   : > { %p3727_p12 = pnand %p4196_p9, %p3340_p11 }
  0x15   : > { %p3550_p0 = pneg %p3727_p12 }
  0x17   : > { %p3551_p1 = pnand %p3550_p0, %p3549_p13 }
  0x19   : > { %p3552_p2 = pneg %p3551_p1 }
  0x1b   : > { %p3557_p4 = pnand %p3555_p3, %p3552_p2 }
  0x1d   : > { %3560 = shalt.err (!%p3557_p4)
}
  0x1e   : > { %s3561_s8 = scalar_lea.vmem %s129_s26, 16384  ;;  %p3569_p9 = scmp.lt.s32.totalorder %s129_s26, %s129_s26 }
  0x1f   : > { %p3562_p7 = scmp.ne.s32.totalorder %s129_s26, %s3561_s8  ;;  %p3570_p6 = scmp.lt.s32.totalorder %s3561_s8, %s3561_s8 }
  0x21   : > { %p3564_p8 = pnand %p3562_p7, %p3550_p0  ;;  %p3571_p5 = por %p3570_p6, %p3569_p9 }
  0x23   : > { %p3565_p11 = pneg %p3564_p8 }
  0x25   : > { %p3572_p10 = pnand %p3571_p5, %p3565_p11 }
  0x27   : > { %3575 = shalt.err (!%p3572_p10)
}
  0x28   : > { %s3645_s9 = smov 64   ;;  %s3646_s10 = smov 4  }
  0x29   : > { %3343 = dma.hbm_to_vmem [thread:$0]  (!%p3727_p12), %s4193_s1, 16384, %s129_s26, [#allocation3], %s3645_s9, %s3645_s9, %s3646_s10  }
  0x2a   : > { %p4203_p13 = scmp.ne.s32.totalorder %s4201_s24, 0 }
  0x2b   : > { %p4204_p1 = scmp.eq.s32.totalorder (!%p4203_p13), %s3691_s16, 0 }
  0x2c   : > { %155 = sbr.rel (%p4203_p13) target bundleno = 484 (0x1e4), region = 32 }
  0x33   : > { %3621 = dma.done.wait (%p4204_p1), [#allocation3], 16384   ;;  %p4205_p0 = pmov %p4204_p1 }
  0x34   : > { %v3388_v0 = vld [vmem:[#allocation2 + $0x140] sm:$0xff]   ;;  %v3392_v4 = vld [vmem:[#allocation2 + $0x148] sm:$0xff]   ;;  %v3396_v8 = vld [vmem:[#allocation2 + $0x150] sm:$0xff]   ;;  %p179_p5 = scmp.lt.s32.totalorder %s3691_s16, 1  ;;  %vm281_vm0 = vsmask.f32 3328 }
  0x35   : > { %3623 = vsyncadd (%p4205_p0), [#allocation3], 4294950912  ;;  %v3389_v1 = vld [vmem:[#allocation2 + $0x1c0] sm:$0xff]   ;;  %3013 = vmatprep.subr.bf16.mxu0 %v3388_v0  ;;  %v3393_v5 = vld [vmem:[#allocation2 + $0x1c8] sm:$0xff]   ;;  %vm282_vm1 = vsmask.f32 7440 }
  0x36   : > { %v3390_v2 = vld [vmem:[#allocation2 + $0x100] sm:$0xff]   ;;  %3053 = vmatprep.subr.bf16.mxu1 %v3389_v1  ;;  %v3394_v6 = vld [vmem:[#allocation2 + $0x108] sm:$0xff]   ;;  %v3397_v9 = vld [vmem:[#allocation2 + $0x1d0] sm:$0xff]   ;;  %s180_s19 = scalar_select %p179_p5, %s3691_s16, 1 }
  0x37   : > { %v3391_v3 = vld [vmem:[#allocation2 + $0x180] sm:$0xff]   ;;  %3014 = vmatpush3.bf16.msra.mxu0 %v3390_v2  ;;  %v3395_v7 = vld [vmem:[#allocation2 + $0x188] sm:$0xff]   ;;  %v3398_v10 = vld [vmem:[#allocation2 + $0x110] sm:$0xff]   ;;  %s176_s29 = sand.u32 1, %s3634_s13   ;;  %s2989_s5 = sshll.u32 %s3691_s16, 9 }
  0x38   : > { %3054 = vmatpush3.bf16.msra.mxu1 %v3391_v3  ;;  %3015 = vmatprep.subr.bf16.mxu0 %v3392_v4  ;;  %v3399_v11 = vld [vmem:[#allocation2 + $0x190] sm:$0xff]   ;;  %v3400_v12 = vld [vmem:[#allocation2 + $0x158] sm:$0xff]   ;;  %v3404_v16 = vld [vmem:[#allocation2 + $0x160] sm:$0xff]   ;;  %s3333_s20 = smul.u32 288, %s180_s19  ;;  %s2741_s30 = sshll.u32 %s176_s29, 5 }
  0x39   : > { %3055 = vmatprep.subr.bf16.mxu1 %v3393_v5  ;;  %v3401_v13 = vld [vmem:[#allocation2 + $0x1d8] sm:$0xff]   ;;  %v3405_v17 = vld [vmem:[#allocation2 + $0x1e0] sm:$0xff]   ;;  %v3408_v20 = vld [vmem:[#allocation2 + $0x168] sm:$0xff]   ;;  %s4132_s4 = scalar_lea.vmem [#allocation5], %s2741_s30  ;;  %s4144_s9 = scalar_lea.hbm %s4195_s3, %s2989_s5 }
  0x3a   : > { %v3402_v14 = vld [vmem:[#allocation2 + $0x118] sm:$0xff]   ;;  %v3406_v18 = vld [vmem:[#allocation2 + $0x120] sm:$0xff]   ;;  %v3409_v21 = vld [vmem:[#allocation2 + $0x1e8] sm:$0xff]   ;;  %s3758_s26 = scalar_lea.vmem %s4192_s0, %s3333_s20  ;;  %s2661_s6 = sshll.u32 %s4132_s4, 4  ;;  %s4146_s6 = int_to_ptr.vmem [resolvable:$true] %s2661_s6 }
  0x3b   : > { %3016 = vmatpush3.bf16.msra.mxu0 %v3394_v6  ;;  %v3403_v15 = vld [vmem:[#allocation2 + $0x198] sm:$0xff]   ;;  %v3407_v19 = vld [vmem:[#allocation2 + $0x1a0] sm:$0xff]   ;;  %v3410_v22 = vld [vmem:[#allocation2 + $0x128] sm:$0xff]   ;;  %s4151_s10 = scalar_lea.sflag [#allocation4], %s176_s29  ;;  %s3576_s16 = scalar_lea.vmem %s4146_s6, 512 }
  0x3c   : > { %3056 = vmatpush3.bf16.msra.mxu1 %v3395_v7  ;;  %3017 = vmatprep.subr.bf16.mxu0 %v3396_v8  ;;  %v3411_v23 = vld [vmem:[#allocation2 + $0x1a8] sm:$0xff]   ;;  %v3412_v24 = vld [vmem:[#allocation2 + $0x170] sm:$0xff]   ;;  %v3416_v28 = vld [vmem:[#allocation2 + $0x178] sm:$0xff]   ;;  %p3577_p6 = scmp.ne.s32.totalorder %s4146_s6, %s3576_s16  ;;  %p4208_p9 = scmp.ne.s32.totalorder %s4199_s22, 0 }
  0x3d   : > { %3057 = vmatprep.subr.bf16.mxu1 %v3397_v9  ;;  %v3413_v25 = vld [vmem:[#allocation2 + $0x1f0] sm:$0xff]   ;;  %v3417_v29 = vld [vmem:[#allocation2 + $0x1f8] sm:$0xff]   ;;  %v3761_v32 = vld [vmem:[%s3758_s26] sm:$0xff]  ;;  %s3647_s11 = smov [#allocation5]  }
  0x3e   : > { %v3414_v26 = vld [vmem:[#allocation2 + $0x130] sm:$0xff]   ;;  %v3418_v30 = vld [vmem:[#allocation2 + $0x138] sm:$0xff]   ;;  %v3764_v33 = vld [vmem:[%s3758_s26 + $0x20] sm:$0xff]  ;;  %v285_v36 = vshrl.u32 %v3761_v32, 16  ;;  %v288_v37 = vshll.u32 %v3761_v32, 16  ;;  %p3578_p10 = pnand %p3577_p6, %p4208_p9  ;;  %s3580_s17 = sshll.u32 %s3647_s11, 4  ;;  %s3581_s17 = int_to_ptr.vmem [resolvable:$false] %s3580_s17 }
  0x3f   : > { %3018 = vmatpush3.bf16.msra.mxu0 %v3398_v10  ;;  %v3415_v27 = vld [vmem:[#allocation2 + $0x1b0] sm:$0xff]   ;;  %v3419_v31 = vld [vmem:[#allocation2 + $0x1b8] sm:$0xff]   ;;  %v313_v39 = vshrl.u32 %v3764_v33, 16  ;;  %v316_v40 = vshll.u32 %v3764_v33, 16  ;;  %v3773_v42 = vld [vmem:[%s3758_s26 + $0x8] sm:$0xff]  ;;  %s3582_s19 = scalar_lea.vmem %s3581_s17, 1024  ;;  %p3583_p2 = scmp.lt.s32.totalorder %s4146_s6, %s3581_s17 }
  0x40   : > { %3058 = vmatpush3.bf16.msra.mxu1 %v3399_v11  ;;  %3019 = vmatprep.subr.bf16.mxu0 %v3400_v12  ;;  %v265_v34 = vld [vmem:[%s3758_s26 + $0x10] sm:$0x11]  ;;  %v3776_v43 = vld [vmem:[%s3758_s26 + $0x28] sm:$0xff]  ;;  %v266_v44 = vld [vmem:[%s3758_s26 + $0x18] sm:$0x11]  ;;  %v287_v45 = vrot.slane %v285_v36, 4  ;;  %p3579_p12 = pneg %p3578_p10  ;;  %p3584_p3 = scmp.lt.s32.totalorder %s3582_s19, %s3576_s16 }
  0x41   : > { %3059 = vmatprep.subr.bf16.mxu1 %v3401_v13  ;;  %v267_v35 = vld [vmem:[%s3758_s26 + $0x30] sm:$0x11]  ;;  %v294_v38 = vshll.u32 %v265_v34, 16  ;;  %v290_v46 = vrot.slane %v288_v37, 5  ;;  %v315_v48 = vrot.slane %v313_v39, 4  ;;  %v318_v50 = vrot.slane %v316_v40, 5  ;;  %vm3786_vm2 = vmor %vm281_vm0, %vm282_vm1 }
  0x42   : > { %v322_v41 = vshll.u32 %v267_v35, 16  ;;  %v268_v49 = vld [vmem:[%s3758_s26 + $0x38] sm:$0x11]  ;;  %v299_v52 = vshrl.u32 %v3773_v42, 16  ;;  %v302_v53 = vshll.u32 %v3773_v42, 16  ;;  %v308_v55 = vshll.u32 %v266_v44, 16  ;;  %p3585_p4 = por %p3584_p3, %p3583_p2 }
  0x43   : > { %3020 = vmatpush3.bf16.msra.mxu0 %v3402_v14  ;;  %v296_v47 = vrot.slane %v294_v38, 5  ;;  %v291_v54 = vor.u32 %v290_v46, %v287_v45  ;;  %v327_v56 = vshrl.u32 %v3776_v43, 16  ;;  %v330_v57 = vshll.u32 %v3776_v43, 16  ;;  %v3420_v58 = vld [vmem:[#allocation2 + $0x40] sm:$0xff]   ;;  %v3811_v37 = vld [vmem:[%s3758_s26 + $0x48] sm:$0xff] }
  0x44   : > { %3060 = vmatpush3.bf16.msra.mxu1 %v3403_v15  ;;  %3021 = vmatprep.subr.bf16.mxu0 %v3404_v16  ;;  %v324_v51 = vrot.slane %v322_v41, 5  ;;  %v319_v60 = vor.u32 %v318_v50, %v315_v48  ;;  %v301_v61 = vrot.slane %v299_v52, 4  ;;  %v304_v62 = vrot.slane %v302_v53, 5  ;;  %v3421_v0 = vld [vmem:[#allocation2 + $0xc0] sm:$0xff]   ;;  %v3814_v38 = vld [vmem:[%s3758_s26 + $0x68] sm:$0xff]  ;;  %v3428_v53 = vld [vmem:[#allocation2 + $0x50] sm:$0xff]   ;;  %p3586_p7 = pnand %p3585_p4, %p3579_p12 }
  0x45   : > { %3061 = vmatprep.subr.bf16.mxu1 %v3405_v17  ;;  %v336_v63 = vshll.u32 %v268_v49, 16  ;;  %v292_v1 = vrot.slane %v291_v54, 4  ;;  %v329_v2 = vrot.slane %v327_v56, 4  ;;  %v332_v3 = vrot.slane %v330_v57, 5  ;;  %v3422_v15 = vld [vmem:[#allocation2] sm:$0xff]  }
  0x46   : > { %v320_v4 = vrot.slane %v319_v60, 4  ;;  %v305_v5 = vor.u32 %v304_v62, %v301_v61  ;;  %v310_v6 = vrot.slane %v308_v55, 5  ;;  %v3423_v17 = vld [vmem:[#allocation2 + $0x80] sm:$0xff]   ;;  %v270_v41 = vld [vmem:[%s3758_s26 + $0x58] sm:$0x11]  ;;  %v355_v50 = vshrl.u32 %v3811_v37, 16 }
  0x47   : > { %3022 = vmatpush3.bf16.msra.mxu0 %v3406_v18  ;;  %v297_v7 = vsel %vm3786_vm2, %v292_v1, %v296_v47  ;;  %v333_v8 = vor.u32 %v332_v3, %v329_v2  ;;  %v338_v9 = vrot.slane %v336_v63, 5  ;;  %v3424_v18 = vld [vmem:[#allocation2 + $0x48] sm:$0xff]   ;;  %v272_v44 = vld [vmem:[%s3758_s26 + $0x78] sm:$0x11]  ;;  %v364_v52 = vshll.u32 %v270_v41, 16 }
  0x48   : > { %3062 = vmatpush3.bf16.msra.mxu1 %v3407_v19  ;;  %3023 = vmatprep.subr.bf16.mxu0 %v3408_v20  ;;  %v325_v10 = vsel %vm3786_vm2, %v320_v4, %v324_v51  ;;  %v306_v11 = vrot.slane %v305_v5, 4  ;;  %v3425_v20 = vld [vmem:[#allocation2 + $0xc8] sm:$0xff]   ;;  %v358_v51 = vshll.u32 %v3811_v37, 16  ;;  %v383_v55 = vshrl.u32 %v3814_v38, 16 }
  0x49   : > { %3063 = vmatprep.subr.bf16.mxu1 %v3409_v21  ;;  %v2743_v12 = vcombine.low %v297_v7, %v325_v10  ;;  %v2744_v13 = vcombine.high %v297_v7, %v325_v10  ;;  %v334_v14 = vrot.slane %v333_v8, 4  ;;  %v386_v56 = vshll.u32 %v3814_v38, 16 }
  0x4a   : > { %v311_v16 = vsel %vm3786_vm2, %v306_v11, %v310_v6  ;;  %v392_v57 = vshll.u32 %v272_v44, 16  ;;  %v357_v61 = vrot.slane %v355_v50, 4  ;;  %v360_v62 = vrot.slane %v358_v51, 5  ;;  %v3430_v6 = vld [vmem:[#allocation2 + $0x10] sm:$0xff]   ;;  %v3853_v44 = vld [vmem:[%s3758_s26 + $0x88] sm:$0xff] }
  0x4b   : > { %3024 = vmatpush3.bf16.msra.mxu0 %v3410_v22  ;;  %861 = vmatprep.mubr.bf16.mxu0 %v2744_v13  ;;  %v339_v19 = vsel %vm3786_vm2, %v334_v14, %v338_v9  ;;  %v366_v63 = vrot.slane %v364_v52, 5  ;;  %v385_v1 = vrot.slane %v383_v55, 4  ;;  %v388_v2 = vrot.slane %v386_v56, 5  ;;  %v3431_v11 = vld [vmem:[#allocation2 + $0x90] sm:$0xff]  }
  0x4c   : > { %3064 = vmatpush3.bf16.msra.mxu1 %v3411_v23  ;;  %3025 = vmatprep.subr.bf16.mxu0 %v3412_v24  ;;  %v2745_v21 = vcombine.low %v311_v16, %v339_v19  ;;  %v2746_v22 = vcombine.high %v311_v16, %v339_v19  ;;  %v3426_v23 = vld [vmem:[#allocation2 + $0x8] sm:$0xff]   ;;  %v3799_v24 = vld [vmem:[%s3758_s26 + $0x40] sm:$0xff]  ;;  %v394_v3 = vrot.slane %v392_v57, 5  ;;  %v361_v5 = vor.u32 %v360_v62, %v357_v61  ;;  %v3433_v19 = vld [vmem:[#allocation2 + $0xd8] sm:$0xff]  }
  0x4d   : > { %3065 = vmatprep.subr.bf16.mxu1 %v3413_v25  ;;  %v3802_v25 = vld [vmem:[%s3758_s26 + $0x60] sm:$0xff]  ;;  %v2855_v7 = vcombine.low %v3764_v33, %v3799_v24  ;;  %v2856_v8 = vcombine.high %v3764_v33, %v3799_v24  ;;  %v389_v10 = vor.u32 %v388_v2, %v385_v1  ;;  %v2858_v13 = vcombine.high %v3776_v43, %v3811_v37 }
  0x4e   : > { %926 = vmatprep.mubr.bf16.mxu1 %v2746_v22  ;;  %v369_v34 = vshrl.u32 %v3802_v25, 16  ;;  %v372_v35 = vshll.u32 %v3802_v25, 16  ;;  %v411_v55 = vshrl.u32 %v3853_v44, 16  ;;  %v414_v56 = vshll.u32 %v3853_v44, 16 }
  0x4f   : > { %3026 = vmatpush3.bf16.msra.mxu0 %v3414_v26  ;;  %v269_v26 = vld [vmem:[%s3758_s26 + $0x50] sm:$0x11] }
  0x50   : > { %3066 = vmatpush3.bf16.msra.mxu1 %v3415_v27  ;;  %3027 = vmatprep.subr.bf16.mxu0 %v3416_v28  ;;  %v271_v27 = vld [vmem:[%s3758_s26 + $0x70] sm:$0x11]  ;;  %v341_v28 = vshrl.u32 %v3799_v24, 16  ;;  %v371_v46 = vrot.slane %v369_v34, 4  ;;  %v374_v47 = vrot.slane %v372_v35, 5  ;;  %v413_v1 = vrot.slane %v411_v55, 4 }
  0x51   : > { %3067 = vmatprep.subr.bf16.mxu1 %v3417_v29  ;;  %v344_v29 = vshll.u32 %v3799_v24, 16  ;;  %v378_v36 = vshll.u32 %v271_v27, 16  ;;  %v416_v2 = vrot.slane %v414_v56, 5 }
  0x52   : > { %v343_v39 = vrot.slane %v341_v28, 4  ;;  %v375_v54 = vor.u32 %v374_v47, %v371_v46 }
  0x53   : > { %3028 = vmatpush3.bf16.msra.mxu0 %v3418_v30  ;;  %v3427_v30 = vld [vmem:[#allocation2 + $0x88] sm:$0xff]   ;;  %v346_v40 = vrot.slane %v344_v29, 5  ;;  %v380_v48 = vrot.slane %v378_v36, 5  ;;  %v3842_v29 = vld [vmem:[%s3758_s26 + $0xa0] sm:$0xff] }
  0x54   : > { %3068 = vmatpush3.bf16.msra.mxu1 %v3419_v31  ;;  %3093 = vmatprep.subr.bf16.mxu0 %v3420_v58  ;;  %v350_v31 = vshll.u32 %v269_v26, 16  ;;  %v3429_v58 = vld [vmem:[#allocation2 + $0xd0] sm:$0xff]   ;;  %v3839_v26 = vld [vmem:[%s3758_s26 + $0x80] sm:$0xff]  ;;  %v428_v41 = vshll.u32 %v3842_v29, 16 }
  0x55   : > { %3133 = vmatprep.subr.bf16.mxu1 %v3421_v0  ;;  %v347_v49 = vor.u32 %v346_v40, %v343_v39  ;;  %v376_v0 = vrot.slane %v375_v54, 4  ;;  %v397_v34 = vshrl.u32 %v3839_v26, 16  ;;  %v2860_v35 = vcombine.high %v3802_v25, %v3839_v26 }
  0x56   : > { %862 = vmatmul.mubr.bf16.vlgmr.msra.gmra.mrb[0].mxu0 %v2743_v12  ;;  %v352_v45 = vrot.slane %v350_v31, 5  ;;  %v2857_v12 = vcombine.low %v3776_v43, %v3811_v37  ;;  %v275_v31 = vld [vmem:[%s3758_s26 + $0xb0] sm:$0x11]  ;;  %v400_v36 = vshll.u32 %v3839_v26, 16  ;;  %v425_v40 = vshrl.u32 %v3842_v29, 16 }
  0x57   : > { %3094 = vmatpush3.bf16.msra.mxu0 %v3422_v15  ;;  %927 = vmatmul.mubr.bf16.vlgmr.msra.gmra.mrb[0].mxu1 %v2745_v21  ;;  %v348_v60 = vrot.slane %v347_v49, 4  ;;  %v381_v9 = vsel %vm3786_vm2, %v376_v0, %v380_v48  ;;  %v362_v15 = vrot.slane %v361_v5, 4  ;;  %v3434_v21 = vld [vmem:[#allocation2 + $0x18] sm:$0xff]   ;;  %v399_v46 = vrot.slane %v397_v34, 4  ;;  %v3437_v0 = vld [vmem:[#allocation2 + $0xe0] sm:$0xff]  }
  0x58   : > { %3095 = vmatprep.subr.bf16.mxu0 %v3424_v18  ;;  %3134 = vmatpush3.bf16.msra.mxu1 %v3423_v17  ;;  %v3432_v17 = vld [vmem:[#allocation2 + $0x58] sm:$0xff]   ;;  %v390_v18 = vrot.slane %v389_v10, 4  ;;  %v434_v47 = vshll.u32 %v275_v31, 16  ;;  %v402_v50 = vrot.slane %v400_v36, 5  ;;  %v427_v52 = vrot.slane %v425_v40, 4  ;;  %v3441_v31 = vld [vmem:[#allocation2 + $0xe8] sm:$0xff]  }
  0x59   : > { %3135 = vmatprep.subr.bf16.mxu1 %v3425_v20  ;;  %v353_v4 = vsel %vm3786_vm2, %v348_v60, %v352_v45  ;;  %v367_v20 = vsel %vm3786_vm2, %v362_v15, %v366_v63  ;;  %v3856_v45 = vld [vmem:[%s3758_s26 + $0xa8] sm:$0xff]  ;;  %v274_v48 = vld [vmem:[%s3758_s26 + $0x98] sm:$0x11]  ;;  %v3436_v63 = vld [vmem:[#allocation2 + $0x60] sm:$0xff]   ;;  %v2861_v34 = vcombine.low %v3814_v38, %v3853_v44 }
  0x5a   : > { %v2748_v14 = vcombine.high %v353_v4, %v381_v9  ;;  %v2747_v16 = vcombine.low %v353_v4, %v381_v9  ;;  %v395_v22 = vsel %vm3786_vm2, %v390_v18, %v394_v3  ;;  %v276_v49 = vld [vmem:[%s3758_s26 + $0xb8] sm:$0x11]  ;;  %v436_v54 = vrot.slane %v434_v47, 5  ;;  %v3438_v15 = vld [vmem:[#allocation2 + $0x20] sm:$0xff]  }
  0x5b   : > { %3096 = vmatpush3.bf16.msra.mxu0 %v3426_v23  ;;  %v3435_v23 = vld [vmem:[#allocation2 + $0x98] sm:$0xff]   ;;  %v2750_v27 = vcombine.high %v367_v20, %v395_v22  ;;  %v2749_v28 = vcombine.low %v367_v20, %v395_v22  ;;  %v420_v57 = vshll.u32 %v274_v48, 16  ;;  %v439_v61 = vshrl.u32 %v3856_v45, 16 }
  0x5c   : > { %3097 = vmatprep.subr.bf16.mxu0 %v3428_v53  ;;  %3136 = vmatpush3.bf16.msra.mxu1 %v3427_v30  ;;  %v273_v30 = vld [vmem:[%s3758_s26 + $0x90] sm:$0x11]  ;;  %v430_v53 = vrot.slane %v428_v41, 5  ;;  %v442_v62 = vshll.u32 %v3856_v45, 16  ;;  %v448_v4 = vshll.u32 %v276_v49, 16  ;;  %v2862_v20 = vcombine.high %v3814_v38, %v3853_v44  ;;  %v3443_v41 = vld [vmem:[#allocation2 + $0xa8] sm:$0xff]  }
  0x5d   : > { %3137 = vmatprep.subr.bf16.mxu1 %v3429_v58  ;;  %869 = vmatprep.mubr.bf16.mxu0 %v2748_v14  ;;  %v406_v39 = vshll.u32 %v273_v30, 16  ;;  %v403_v58 = vor.u32 %v402_v50, %v399_v46  ;;  %v422_v3 = vrot.slane %v420_v57, 5  ;;  %v441_v9 = vrot.slane %v439_v61, 4  ;;  %v3879_v46 = vld [vmem:[%s3758_s26 + $0xc0] sm:$0xff]  ;;  %v277_v50 = vld [vmem:[%s3758_s26 + $0xd0] sm:$0x11] }
  0x5e   : > { %870 = vmatmul.mubr.bf16.gmra.mrb[4].mxu0 %v2747_v16  ;;  %934 = vmatprep.mubr.bf16.mxu1 %v2750_v27  ;;  %v431_v60 = vor.u32 %v430_v53, %v427_v52  ;;  %v444_v10 = vrot.slane %v442_v62, 5  ;;  %v450_v14 = vrot.slane %v448_v4, 5  ;;  %v3440_v27 = vld [vmem:[#allocation2 + $0x68] sm:$0xff]   ;;  %v3882_v49 = vld [vmem:[%s3758_s26 + $0xe0] sm:$0xff]  ;;  %v453_v52 = vshrl.u32 %v3879_v46, 16 }
  0x5f   : > { %3098 = vmatpush3.bf16.msra.mxu0 %v3430_v6  ;;  %935 = vmatmul.mubr.bf16.gmra.mrb[4].mxu1 %v2749_v28  ;;  %v408_v51 = vrot.slane %v406_v39, 5  ;;  %v404_v5 = vrot.slane %v403_v58, 4  ;;  %v2859_v28 = vcombine.low %v3802_v25, %v3839_v26  ;;  %v3442_v39 = vld [vmem:[#allocation2 + $0x28] sm:$0xff]   ;;  %v456_v53 = vshll.u32 %v3879_v46, 16  ;;  %v278_v62 = vld [vmem:[%s3758_s26 + $0xd8] sm:$0x11] }
  0x60   : > { %3138 = vmatpush3.bf16.msra.mxu1 %v3431_v11  ;;  %3099 = vmatprep.subr.bf16.mxu0 %v3432_v17  ;;  %v432_v6 = vrot.slane %v431_v60, 4  ;;  %v417_v11 = vor.u32 %v416_v2, %v413_v1  ;;  %v445_v18 = vor.u32 %v444_v10, %v441_v9  ;;  %v481_v55 = vshrl.u32 %v3882_v49, 16  ;;  %v3891_v57 = vld [vmem:[%s3758_s26 + $0xc8] sm:$0xff] }
  0x61   : > { %3139 = vmatprep.subr.bf16.mxu1 %v3433_v19  ;;  %v409_v16 = vsel %vm3786_vm2, %v404_v5, %v408_v51  ;;  %v3439_v19 = vld [vmem:[#allocation2 + $0xa0] sm:$0xff]   ;;  %v279_v51 = vld [vmem:[%s3758_s26 + $0xf0] sm:$0x11]  ;;  %v484_v56 = vshll.u32 %v3882_v49, 16  ;;  %v3894_v58 = vld [vmem:[%s3758_s26 + $0xe8] sm:$0xff]  ;;  %v455_v60 = vrot.slane %v453_v52, 4 }
  0x62   : > { %v437_v17 = vsel %vm3786_vm2, %v432_v6, %v436_v54  ;;  %v418_v22 = vrot.slane %v417_v11, 4  ;;  %v446_v30 = vrot.slane %v445_v18, 4  ;;  %v462_v54 = vshll.u32 %v277_v50, 16 }
  0x63   : > { %3100 = vmatpush3.bf16.msra.mxu0 %v3434_v21  ;;  %v2752_v21 = vcombine.high %v409_v16, %v437_v17  ;;  %v490_v61 = vshll.u32 %v279_v51, 16  ;;  %v483_v2 = vrot.slane %v481_v55, 4  ;;  %v467_v5 = vshrl.u32 %v3891_v57, 16  ;;  %v3447_v51 = vld [vmem:[#allocation2 + $0xb0] sm:$0xff]   ;;  %v3448_v55 = vld [vmem:[#allocation2 + $0x78] sm:$0xff]  }
  0x64   : > { %3140 = vmatpush3.bf16.msra.mxu1 %v3435_v23  ;;  %3101 = vmatprep.subr.bf16.mxu0 %v3436_v63  ;;  %v2751_v23 = vcombine.low %v409_v16, %v437_v17  ;;  %v423_v36 = vsel %vm3786_vm2, %v418_v22, %v422_v3  ;;  %v451_v40 = vsel %vm3786_vm2, %v446_v30, %v450_v14  ;;  %v280_v63 = vld [vmem:[%s3758_s26 + $0xf8] sm:$0x11]  ;;  %v464_v1 = vrot.slane %v462_v54, 5  ;;  %v3444_v16 = vld [vmem:[#allocation2 + $0x70] sm:$0xff]  }
  0x65   : > { %3141 = vmatprep.subr.bf16.mxu1 %v3437_v0  ;;  %877 = vmatprep.mubr.bf16.mxu0 %v2752_v21  ;;  %v2754_v47 = vcombine.high %v423_v36, %v451_v40  ;;  %v2753_v48 = vcombine.low %v423_v36, %v451_v40  ;;  %v458_v0 = vrot.slane %v456_v53, 5  ;;  %v486_v3 = vrot.slane %v484_v56, 5  ;;  %v3445_v17 = vld [vmem:[#allocation2 + $0xf0] sm:$0xff]  }
  0x66   : > { %878 = vmatmul.mubr.bf16.gmra.mrb[8].mxu0 %v2751_v23  ;;  %v492_v4 = vrot.slane %v490_v61, 5  ;;  %v470_v6 = vshll.u32 %v3891_v57, 16  ;;  %v476_v9 = vshll.u32 %v278_v62, 16  ;;  %v495_v14 = vshrl.u32 %v3894_v58, 16  ;;  %v3449_v61 = vld [vmem:[#allocation2 + $0xf8] sm:$0xff]  }
  0x67   : > { %3102 = vmatpush3.bf16.msra.mxu0 %v3438_v15  ;;  %942 = vmatprep.mubr.bf16.mxu1 %v2754_v47  ;;  %v459_v10 = vor.u32 %v458_v0, %v455_v60  ;;  %v487_v11 = vor.u32 %v486_v3, %v483_v2  ;;  %v498_v15 = vshll.u32 %v3894_v58, 16  ;;  %v469_v18 = vrot.slane %v467_v5, 4  ;;  %v3450_v0 = vld [vmem:[#allocation2 + $0x38] sm:$0xff]  }
  0x68   : > { %3142 = vmatpush3.bf16.msra.mxu1 %v3439_v19  ;;  %3103 = vmatprep.subr.bf16.mxu0 %v3440_v27  ;;  %v472_v19 = vrot.slane %v470_v6, 5  ;;  %v504_v21 = vshll.u32 %v280_v63, 16  ;;  %v497_v27 = vrot.slane %v495_v14, 4  ;;  %v478_v36 = vrot.slane %v476_v9, 5  ;;  %v3451_v2 = vld [vmem:[#allocation2 + $0xb8] sm:$0xff]   ;;  %v3452_v6 = vld [vmem:[#allocation2 + $0x240] sm:$0xff]  }
  0x69   : > { %3143 = vmatprep.subr.bf16.mxu1 %v3441_v31  ;;  %943 = vmatmul.mubr.bf16.gmra.mrb[8].mxu1 %v2753_v48  ;;  %v460_v22 = vrot.slane %v459_v10, 4  ;;  %v488_v23 = vrot.slane %v487_v11, 4  ;;  %v500_v30 = vrot.slane %v498_v15, 5  ;;  %v2792_v40 = vcombine.high %v3761_v32, %v3764_v33  ;;  %v3453_v9 = vld [vmem:[#allocation2 + $0x2c0] sm:$0xff]   ;;  %v3456_v15 = vld [vmem:[#allocation2 + $0x248] sm:$0xff]  }
  0x6a   : > { %v473_v31 = vor.u32 %v472_v19, %v469_v18  ;;  %v506_v50 = vrot.slane %v504_v21, 5  ;;  %v2863_v56 = vcombine.low %v3842_v29, %v3879_v46  ;;  %v2865_v62 = vcombine.low %v3856_v45, %v3891_v57  ;;  %v3454_v11 = vld [vmem:[#allocation2 + $0x200] sm:$0xff]   ;;  %v3458_v18 = vld [vmem:[#allocation2 + $0x208] sm:$0xff]  }
  0x6b   : > { %3104 = vmatpush3.bf16.msra.mxu0 %v3442_v39  ;;  %v3446_v39 = vld [vmem:[#allocation2 + $0x30] sm:$0xff]   ;;  %v493_v47 = vsel %vm3786_vm2, %v488_v23, %v492_v4  ;;  %v501_v48 = vor.u32 %v500_v30, %v497_v27  ;;  %v2794_v5 = vcombine.high %v3773_v42, %v3776_v43  ;;  %v2791_v10 = vcombine.low %v3761_v32, %v3764_v33  ;;  %v3457_v19 = vld [vmem:[#allocation2 + $0x2c8] sm:$0xff]  }
  0x6c   : > { %3144 = vmatpush3.bf16.msra.mxu1 %v3443_v41  ;;  %3105 = vmatprep.subr.bf16.mxu0 %v3444_v16  ;;  %v465_v41 = vsel %vm3786_vm2, %v460_v22, %v464_v1  ;;  %v474_v53 = vrot.slane %v473_v31, 4  ;;  %v2796_v14 = vcombine.high %v3799_v24, %v3802_v25  ;;  %v2793_v16 = vcombine.low %v3773_v42, %v3776_v43  ;;  %v3459_v21 = vld [vmem:[#allocation2 + $0x288] sm:$0xff]   ;;  %v3460_v22 = vld [vmem:[#allocation2 + $0x250] sm:$0xff]   ;;  %v3464_v42 = vld [vmem:[#allocation2 + $0x258] sm:$0xff]  }
  0x6d   : > { %3145 = vmatprep.subr.bf16.mxu1 %v3445_v17  ;;  %v2756_v52 = vcombine.high %v465_v41, %v493_v47  ;;  %v2755_v54 = vcombine.low %v465_v41, %v493_v47  ;;  %v502_v60 = vrot.slane %v501_v48, 4  ;;  %v3455_v17 = vld [vmem:[#allocation2 + $0x280] sm:$0xff]   ;;  %v2798_v32 = vcombine.high %v3811_v37, %v3814_v38  ;;  %v3461_v27 = vld [vmem:[#allocation2 + $0x2d0] sm:$0xff]   ;;  %v3465_v41 = vld [vmem:[#allocation2 + $0x2d8] sm:$0xff]  }
  0x6e   : > { %v479_v63 = vsel %vm3786_vm2, %v474_v53, %v478_v36  ;;  %v2795_v23 = vcombine.low %v3799_v24, %v3802_v25  ;;  %v3462_v30 = vld [vmem:[#allocation2 + $0x210] sm:$0xff]   ;;  %v2800_v31 = vcombine.high %v3839_v26, %v3842_v29  ;;  %v2797_v36 = vcombine.low %v3811_v37, %v3814_v38  ;;  %v3467_v48 = vld [vmem:[#allocation2 + $0x298] sm:$0xff]   ;;  %v3470_v53 = vld [vmem:[#allocation2 + $0x220] sm:$0xff]  }
  0x6f   : > { %3106 = vmatpush3.bf16.msra.mxu0 %v3446_v39  ;;  %885 = vmatprep.mubr.bf16.mxu0 %v2756_v52  ;;  %v507_v1 = vsel %vm3786_vm2, %v502_v60, %v506_v50  ;;  %v3463_v39 = vld [vmem:[#allocation2 + $0x290] sm:$0xff]   ;;  %v2802_v47 = vcombine.high %v3853_v44, %v3856_v45  ;;  %v3468_v50 = vld [vmem:[#allocation2 + $0x260] sm:$0xff]   ;;  %v2801_v60 = vcombine.low %v3853_v44, %v3856_v45  ;;  %v3496_v24 = vld [vmem:[#allocation2 + $0x358] sm:$0xff]  }
  0x70   : > { %3146 = vmatpush3.bf16.msra.mxu1 %v3447_v51  ;;  %3107 = vmatprep.subr.bf16.mxu0 %v3448_v55  ;;  %v2758_v3 = vcombine.high %v479_v63, %v507_v1  ;;  %v2757_v4 = vcombine.low %v479_v63, %v507_v1  ;;  %v2799_v51 = vcombine.low %v3839_v26, %v3842_v29  ;;  %v3469_v52 = vld [vmem:[#allocation2 + $0x2e0] sm:$0xff]   ;;  %v3474_v63 = vld [vmem:[#allocation2 + $0x228] sm:$0xff]   ;;  %v3494_v33 = vld [vmem:[#allocation2 + $0x310] sm:$0xff]  }
  0x71   : > { %886 = vmatmul.mubr.bf16.gmra.mrb[12].mxu0 %v2755_v54  ;;  %3147 = vmatprep.subr.bf16.mxu1 %v3449_v61  ;;  %v3472_v54 = vld [vmem:[#allocation2 + $0x268] sm:$0xff]   ;;  %v2804_v55 = vcombine.high %v3879_v46, %v3882_v49  ;;  %v3471_v61 = vld [vmem:[#allocation2 + $0x2a0] sm:$0xff]   ;;  %v2806_v1 = vcombine.high %v3891_v57, %v3894_v58  ;;  %v3495_v43 = vld [vmem:[#allocation2 + $0x390] sm:$0xff]  }
  0x72   : > { %1263 = vmatprep.mubr.bf16.mxu0 %v2792_v40  ;;  %950 = vmatprep.mubr.bf16.mxu1 %v2758_v3  ;;  %v3466_v40 = vld [vmem:[#allocation2 + $0x218] sm:$0xff]   ;;  %v3476_v3 = vld [vmem:[#allocation2 + $0x270] sm:$0xff]   ;;  %v3501_v25 = vld [vmem:[#allocation2 + $0x3e0] sm:$0xff]  }
  0x73   : > { %3108 = vmatpush3.bf16.msra.mxu0 %v3450_v0  ;;  %951 = vmatmul.mubr.bf16.gmra.mrb[12].mxu1 %v2757_v4  ;;  %v3473_v0 = vld [vmem:[#allocation2 + $0x2e8] sm:$0xff]   ;;  %v2803_v4 = vcombine.low %v3879_v46, %v3882_v49  ;;  %v3498_v37 = vld [vmem:[#allocation2 + $0x318] sm:$0xff]   ;;  %v3502_v26 = vld [vmem:[#allocation2 + $0x320] sm:$0xff]  }
  0x74   : > { %3148 = vmatpush3.bf16.msra.mxu1 %v3451_v2  ;;  %3173 = vmatprep.subr.bf16.mxu0 %v3452_v6  ;;  %v3475_v2 = vld [vmem:[#allocation2 + $0x2a8] sm:$0xff]   ;;  %v3478_v6 = vld [vmem:[#allocation2 + $0x230] sm:$0xff]  }
  0x75   : > { %3213 = vmatprep.subr.bf16.mxu1 %v3453_v9  ;;  %1328 = vmatprep.mubr.bf16.mxu1 %v2794_v5  ;;  %v3477_v5 = vld [vmem:[#allocation2 + $0x2f0] sm:$0xff]   ;;  %v3480_v9 = vld [vmem:[#allocation2 + $0x278] sm:$0xff]   ;;  %v2854_v44 = vld [vmem:[%s3758_s26 + $0x108] sm:$0xff] }
  0x79   : > { %1264 = vmatmul.mubr.bf16.vlgmr.msra.gmra.mrb[16].mxu0 %v2791_v10  ;;  %v2805_v10 = vcombine.low %v3891_v57, %v3894_v58 }
  0x7a   : > { %3174 = vmatpush3.bf16.msra.mxu0 %v3454_v11  ;;  %1271 = vmatprep.mubr.bf16.mxu0 %v2796_v14  ;;  %v3479_v11 = vld [vmem:[#allocation2 + $0x2b0] sm:$0xff]   ;;  %v3482_v14 = vld [vmem:[#allocation2 + $0x238] sm:$0xff]  }
  0x7b   : > { %3175 = vmatprep.subr.bf16.mxu0 %v3456_v15  ;;  %1329 = vmatmul.mubr.bf16.vlgmr.msra.gmra.mrb[16].mxu1 %v2793_v16  ;;  %v3481_v15 = vld [vmem:[#allocation2 + $0x2f8] sm:$0xff]  }
  0x7c   : > { %3214 = vmatpush3.bf16.msra.mxu1 %v3455_v17  ;;  %1336 = vmatprep.mubr.bf16.mxu1 %v2798_v32  ;;  %v3483_v16 = vld [vmem:[#allocation2 + $0x2b8] sm:$0xff]   ;;  %v3484_v17 = vld [vmem:[#allocation2 + $0x340] sm:$0xff]   ;;  %v3488_v32 = vld [vmem:[#allocation2 + $0x348] sm:$0xff]  }
  0x7d   : > { %3215 = vmatprep.subr.bf16.mxu1 %v3457_v19  ;;  %v3486_v19 = vld [vmem:[#allocation2 + $0x300] sm:$0xff]  }
  0x7e   : > { %3176 = vmatpush3.bf16.msra.mxu0 %v3458_v18  ;;  %v3485_v18 = vld [vmem:[#allocation2 + $0x3c0] sm:$0xff]  }
  0x7f   : > { %3177 = vmatprep.subr.bf16.mxu0 %v3460_v22  ;;  %v3489_v22 = vld [vmem:[#allocation2 + $0x3c8] sm:$0xff]  }
  0x80   : > { %3216 = vmatpush3.bf16.msra.mxu1 %v3459_v21  ;;  %v3487_v21 = vld [vmem:[#allocation2 + $0x380] sm:$0xff]  }
  0x81   : > { %1272 = vmatmul.mubr.bf16.gmra.mrb[20].mxu0 %v2795_v23  ;;  %3217 = vmatprep.subr.bf16.mxu1 %v3461_v27  ;;  %v3491_v23 = vld [vmem:[#allocation2 + $0x388] sm:$0xff]   ;;  %v3492_v27 = vld [vmem:[#allocation2 + $0x350] sm:$0xff]  }
  0x82   : > { %3178 = vmatpush3.bf16.msra.mxu0 %v3462_v30  ;;  %1279 = vmatprep.mubr.bf16.mxu0 %v2800_v31  ;;  %v3500_v30 = vld [vmem:[#allocation2 + $0x360] sm:$0xff]   ;;  %v3506_v31 = vld [vmem:[#allocation2 + $0x328] sm:$0xff]  }
  0x83   : > { %3179 = vmatprep.subr.bf16.mxu0 %v3464_v42  ;;  %1337 = vmatmul.mubr.bf16.gmra.mrb[20].mxu1 %v2797_v36  ;;  %v3503_v42 = vld [vmem:[#allocation2 + $0x3a0] sm:$0xff]  }
  0x84   : > { %3218 = vmatpush3.bf16.msra.mxu1 %v3463_v39  ;;  %1344 = vmatprep.mubr.bf16.mxu1 %v2802_v47  ;;  %v2853_v36 = vld [vmem:[%s3758_s26 + $0x100] sm:$0xff]  ;;  %v3505_v39 = vld [vmem:[#allocation2 + $0x3e8] sm:$0xff]  }
  0x85   : > { %3219 = vmatprep.subr.bf16.mxu1 %v3465_v41  ;;  %v2868_v38 = vcombine.high %v3882_v49, %v2853_v36  ;;  %v2085_v41 = vshll.u32 %v2853_v36, 16  ;;  %v3507_v47 = vld [vmem:[#allocation2 + $0x3a8] sm:$0xff]  }
  0x86   : > { %3180 = vmatpush3.bf16.msra.mxu0 %v3466_v40  ;;  %v2870_v40 = vcombine.high %v3894_v58, %v2854_v44 }
  0x87   : > { %3181 = vmatprep.subr.bf16.mxu0 %v3468_v50 }
  0x88   : > { %3220 = vmatpush3.bf16.msra.mxu1 %v3467_v48  ;;  %v3508_v48 = vld [vmem:[#allocation2 + $0x370] sm:$0xff]  }
  0x89   : > { %1280 = vmatmul.mubr.bf16.gmra.mrb[24].mxu0 %v2799_v51  ;;  %3221 = vmatprep.subr.bf16.mxu1 %v3469_v52  ;;  %v3510_v51 = vld [vmem:[#allocation2 + $0x330] sm:$0xff]   ;;  %v2096_v52 = vshrl.u32 %v2854_v44, 16 }
  0x8a   : > { %3182 = vmatpush3.bf16.msra.mxu0 %v3470_v53  ;;  %1287 = vmatprep.mubr.bf16.mxu0 %v2804_v55  ;;  %v3512_v53 = vld [vmem:[#allocation2 + $0x378] sm:$0xff]   ;;  %v2099_v55 = vshll.u32 %v2854_v44, 16 }
  0x8b   : > { %3183 = vmatprep.subr.bf16.mxu0 %v3472_v54  ;;  %1345 = vmatmul.mubr.bf16.gmra.mrb[24].mxu1 %v2801_v60  ;;  %v3514_v60 = vld [vmem:[#allocation2 + $0x338] sm:$0xff]  }
  0x8c   : > { %3222 = vmatpush3.bf16.msra.mxu1 %v3471_v61  ;;  %1352 = vmatprep.mubr.bf16.mxu1 %v2806_v1  ;;  %v2903_v61 = vld [vmem:[%s3758_s26 + $0x20] sm:$0xff]  ;;  %v3992_v1 = vrot.slane %v2099_v55, 5  ;;  %v2914_v55 = vld [vmem:[%s3758_s26 + $0x78] sm:$0x11] }
  0x8d   : > { %3223 = vmatprep.subr.bf16.mxu1 %v3473_v0 }
  0x8e   : > { %3184 = vmatpush3.bf16.msra.mxu0 %v3474_v63  ;;  %v2905_v63 = vld [vmem:[%s3758_s26 + $0x30] sm:$0x11] }
  0x8f   : > { %3185 = vmatprep.subr.bf16.mxu0 %v3476_v3  ;;  %v1886_v3 = vshrl.u32 %v2903_v61, 16 }
  0x90   : > { %3224 = vmatpush3.bf16.msra.mxu1 %v3475_v2  ;;  %v2907_v2 = vld [vmem:[%s3758_s26 + $0x40] sm:$0xff] }
  0x91   : > { %1288 = vmatmul.mubr.bf16.gmra.mrb[28].mxu0 %v2803_v4  ;;  %3225 = vmatprep.subr.bf16.mxu1 %v3477_v5  ;;  %v1889_v4 = vshll.u32 %v2903_v61, 16  ;;  %v1895_v5 = vshll.u32 %v2905_v63, 16 }
  0x92   : > { %3186 = vmatpush3.bf16.msra.mxu0 %v3478_v6  ;;  %1747 = vmatprep.mubr.bf16.mxu0 %v2856_v8  ;;  %v3490_v8 = vld [vmem:[#allocation2 + $0x308] sm:$0xff]   ;;  %v1914_v6 = vshrl.u32 %v2907_v2, 16 }
  0x93   : > { %3187 = vmatprep.subr.bf16.mxu0 %v3480_v9  ;;  %1353 = vmatmul.mubr.bf16.gmra.mrb[28].mxu1 %v2805_v10  ;;  %v1917_v9 = vshll.u32 %v2907_v2, 16 }
  0x94   : > { %3226 = vmatpush3.bf16.msra.mxu1 %v3479_v11  ;;  %1812 = vmatprep.mubr.bf16.mxu1 %v2858_v13  ;;  %v3493_v13 = vld [vmem:[#allocation2 + $0x3d0] sm:$0xff]   ;;  %v2904_v11 = vld [vmem:[%s3758_s26 + $0x28] sm:$0xff] }
  0x95   : > { %3227 = vmatprep.subr.bf16.mxu1 %v3481_v15  ;;  %v1888_v15 = vrot.slane %v1886_v3, 4 }
  0x96   : > { %3188 = vmatpush3.bf16.msra.mxu0 %v3482_v14  ;;  %v2906_v14 = vld [vmem:[%s3758_s26 + $0x38] sm:$0x11] }
  0x97   : > { %3253 = vmatprep.subr.bf16.mxu0 %v3484_v17  ;;  %v1897_v17 = vrot.slane %v1895_v5, 5  ;;  %v2916_v5 = vld [vmem:[%s3758_s26 + $0x88] sm:$0xff] }
  0x98   : > { %3228 = vmatpush3.bf16.msra.mxu1 %v3483_v16  ;;  %v1891_v16 = vrot.slane %v1889_v4, 5 }
  0x99   : > { %1748 = vmatmul.mubr.bf16.vlgmr.msra.gmra.mrb[32].mxu0 %v2855_v7  ;;  %3293 = vmatprep.subr.bf16.mxu1 %v3485_v18  ;;  %v2864_v7 = vcombine.high %v3842_v29, %v3879_v46  ;;  %v2867_v29 = vcombine.low %v3882_v49, %v2853_v36  ;;  %v3509_v46 = vld [vmem:[#allocation2 + $0x3f0] sm:$0xff]   ;;  %v2869_v49 = vcombine.low %v3894_v58, %v2854_v44  ;;  %v2908_v18 = vld [vmem:[%s3758_s26 + $0x48] sm:$0xff] }
  0x9a   : > { %3254 = vmatpush3.bf16.msra.mxu0 %v3486_v19  ;;  %1755 = vmatprep.mubr.bf16.mxu0 %v2860_v35  ;;  %v2866_v35 = vcombine.high %v3856_v45, %v3891_v57  ;;  %v3511_v45 = vld [vmem:[#allocation2 + $0x3b0] sm:$0xff]   ;;  %v3513_v57 = vld [vmem:[#allocation2 + $0x3f8] sm:$0xff]  }
  0x9b   : > { %3255 = vmatprep.subr.bf16.mxu0 %v3488_v32  ;;  %1813 = vmatmul.mubr.bf16.vlgmr.msra.gmra.mrb[32].mxu1 %v2857_v12  ;;  %v3497_v12 = vld [vmem:[#allocation2 + $0x3d8] sm:$0xff]   ;;  %v2909_v58 = vld [vmem:[%s3758_s26 + $0x50] sm:$0x11] }
  0x9c   : > { %3294 = vmatpush3.bf16.msra.mxu1 %v3487_v21  ;;  %1820 = vmatprep.mubr.bf16.mxu1 %v2862_v20  ;;  %v3499_v20 = vld [vmem:[#allocation2 + $0x398] sm:$0xff]   ;;  %v1923_v10 = vshll.u32 %v2909_v58, 16  ;;  %v1916_v21 = vrot.slane %v1914_v6, 4 }
  0x9d   : > { %3295 = vmatprep.subr.bf16.mxu1 %v3489_v22  ;;  %v2910_v19 = vld [vmem:[%s3758_s26 + $0x58] sm:$0x11] }
  0x9e   : > { %3256 = vmatpush3.bf16.msra.mxu0 %v3490_v8  ;;  %v3515_v32 = vld [vmem:[#allocation2 + $0x3b8] sm:$0xff]   ;;  %v1919_v8 = vrot.slane %v1917_v9, 5  ;;  %v1925_v22 = vrot.slane %v1923_v10, 5  ;;  %v1965_v10 = vshll.u32 %v2914_v55, 16  ;;  %v2924_v55 = vld [vmem:[%s3758_s26 + $0xc8] sm:$0xff] }
  0x9f   : > { %3257 = vmatprep.subr.bf16.mxu0 %v3492_v27  ;;  %v1892_v27 = vor.u32 %v1891_v16, %v1888_v15  ;;  %v2918_v6 = vld [vmem:[%s3758_s26 + $0x98] sm:$0x11] }
  0xa0   : > { %3296 = vmatpush3.bf16.msra.mxu1 %v3491_v23  ;;  %v1900_v23 = vshrl.u32 %v2904_v11, 16 }
  0xa1   : > { %1756 = vmatmul.mubr.bf16.gmra.mrb[36].mxu0 %v2859_v28  ;;  %3297 = vmatprep.subr.bf16.mxu1 %v3493_v13  ;;  %v3504_v28 = vld [vmem:[#allocation2 + $0x368] sm:$0xff]   ;;  %v1903_v13 = vshll.u32 %v2904_v11, 16 }
  0xa2   : > { %3258 = vmatpush3.bf16.msra.mxu0 %v3494_v33  ;;  %1763 = vmatprep.mubr.bf16.mxu0 %v2864_v7  ;;  %v1909_v33 = vshll.u32 %v2906_v14, 16  ;;  %v2911_v7 = vld [vmem:[%s3758_s26 + $0x60] sm:$0xff] }
  0xa3   : > { %3259 = vmatprep.subr.bf16.mxu0 %v3496_v24  ;;  %1821 = vmatmul.mubr.bf16.gmra.mrb[36].mxu1 %v2861_v34  ;;  %v2082_v34 = vshrl.u32 %v2853_v36, 16  ;;  %v1928_v24 = vshrl.u32 %v2908_v18, 16  ;;  %v1942_v44 = vshrl.u32 %v2911_v7, 16 }
  0xa4   : > { %3298 = vmatpush3.bf16.msra.mxu1 %v3495_v43  ;;  %1828 = vmatprep.mubr.bf16.mxu1 %v2866_v35  ;;  %v1920_v43 = vor.u32 %v1919_v8, %v1916_v21  ;;  %v1937_v35 = vshll.u32 %v2910_v19, 16  ;;  %v1967_v21 = vrot.slane %v1965_v10, 5  ;;  %v2921_v8 = vld [vmem:[%s3758_s26 + $0xb0] sm:$0x11] }
  0xa5   : > { %3299 = vmatprep.subr.bf16.mxu1 %v3497_v12  ;;  %v2084_v50 = vrot.slane %v2082_v34, 4  ;;  %v1931_v12 = vshll.u32 %v2908_v18, 16 }
  0xa6   : > { %3260 = vmatpush3.bf16.msra.mxu0 %v3498_v37  ;;  %v1902_v37 = vrot.slane %v1900_v23, 4  ;;  %v1984_v23 = vshrl.u32 %v2916_v5, 16 }
  0xa7   : > { %3261 = vmatprep.subr.bf16.mxu0 %v3500_v30  ;;  %v1893_v30 = vrot.slane %v1892_v27, 4  ;;  %v1933_v36 = vrot.slane %v1931_v12, 5  ;;  %v1987_v27 = vshll.u32 %v2916_v5, 16 }
  0xa8   : > { %3300 = vmatpush3.bf16.msra.mxu1 %v3499_v20  ;;  %v2913_v20 = vld [vmem:[%s3758_s26 + $0x70] sm:$0x11] }
  0xa9   : > { %1764 = vmatmul.mubr.bf16.gmra.mrb[40].mxu0 %v2863_v56  ;;  %3301 = vmatprep.subr.bf16.mxu1 %v3501_v25  ;;  %v2087_v56 = vrot.slane %v2085_v41, 5  ;;  %v1905_v25 = vrot.slane %v1903_v13, 5  ;;  %v1898_v34 = vsel %vm3786_vm2, %v1893_v30, %v1897_v17  ;;  %v1951_v41 = vshll.u32 %v2913_v20, 16  ;;  %v2919_v17 = vld [vmem:[%s3758_s26 + $0xa0] sm:$0xff] }
  0xaa   : > { %3262 = vmatpush3.bf16.msra.mxu0 %v3502_v26  ;;  %1771 = vmatprep.mubr.bf16.mxu0 %v2868_v38  ;;  %v1911_v26 = vrot.slane %v1909_v33, 5  ;;  %v1939_v38 = vrot.slane %v1937_v35, 5  ;;  %v1993_v13 = vshll.u32 %v2918_v6, 16  ;;  %v1989_v12 = vrot.slane %v1987_v27, 5  ;;  %v2923_v20 = vld [vmem:[%s3758_s26 + $0xc0] sm:$0xff] }
  0xab   : > { %3263 = vmatprep.subr.bf16.mxu0 %v3504_v28  ;;  %1829 = vmatmul.mubr.bf16.gmra.mrb[40].mxu1 %v2865_v62  ;;  %v2088_v54 = vor.u32 %v2087_v56, %v2084_v50  ;;  %v3986_v62 = vrot.slane %v2096_v52, 4  ;;  %v1930_v28 = vrot.slane %v1928_v24, 4  ;;  %v2917_v50 = vld [vmem:[%s3758_s26 + $0x90] sm:$0x11]  ;;  %v2912_v56 = vld [vmem:[%s3758_s26 + $0x68] sm:$0xff]  ;;  %v2007_v30 = vshll.u32 %v2921_v8, 16 }
  0xac   : > { %3302 = vmatpush3.bf16.msra.mxu1 %v3503_v42  ;;  %1836 = vmatprep.mubr.bf16.mxu1 %v2870_v40  ;;  %v2915_v42 = vld [vmem:[%s3758_s26 + $0x80] sm:$0xff]  ;;  %v1945_v40 = vshll.u32 %v2911_v7, 16  ;;  %v1979_v2 = vshll.u32 %v2917_v50, 16  ;;  %v1956_v58 = vshrl.u32 %v2912_v56, 16  ;;  %v1959_v9 = vshll.u32 %v2912_v56, 16 }
  0xad   : > { %3303 = vmatprep.subr.bf16.mxu1 %v3505_v39  ;;  %v3990_v0 = vrot.slane %v2088_v54, 4  ;;  %v1906_v39 = vor.u32 %v1905_v25, %v1902_v37  ;;  %v1998_v7 = vshrl.u32 %v2919_v17, 16  ;;  %v1986_v37 = vrot.slane %v1984_v23, 4  ;;  %v2929_v6 = vld [vmem:[%s3758_s26 + $0xf0] sm:$0x11] }
  0xae   : > { %3264 = vmatpush3.bf16.msra.mxu0 %v3506_v31  ;;  %v1921_v31 = vrot.slane %v1920_v43, 4  ;;  %v1947_v54 = vrot.slane %v1945_v40, 5  ;;  %v1981_v16 = vrot.slane %v1979_v2, 5  ;;  %v1958_v19 = vrot.slane %v1956_v58, 4  ;;  %v2922_v40 = vld [vmem:[%s3758_s26 + $0xb8] sm:$0x11] }
  0xaf   : > { %3265 = vmatprep.subr.bf16.mxu0 %v3508_v48  ;;  %v1934_v48 = vor.u32 %v1933_v36, %v1930_v28  ;;  %v2001_v43 = vshll.u32 %v2919_v17, 16  ;;  %v1995_v35 = vrot.slane %v1993_v13, 5  ;;  %v2925_v28 = vld [vmem:[%s3758_s26 + $0xd0] sm:$0x11]  ;;  %v2920_v36 = vld [vmem:[%s3758_s26 + $0xa8] sm:$0xff]  ;;  %v2029_v50 = vshll.u32 %v2923_v20, 16 }
  0xb0   : > { %3304 = vmatpush3.bf16.msra.mxu1 %v3507_v47  ;;  %v1926_v47 = vsel %vm3786_vm2, %v1921_v31, %v1925_v22  ;;  %v2012_v56 = vshrl.u32 %v2920_v36, 16  ;;  %v2927_v2 = vld [vmem:[%s3758_s26 + $0xe0] sm:$0xff]  ;;  %v2063_v23 = vshll.u32 %v2929_v6, 16 }
  0xb1   : > { %1772 = vmatmul.mubr.bf16.gmra.mrb[44].mxu0 %v2867_v29  ;;  %3305 = vmatprep.subr.bf16.mxu1 %v3509_v46  ;;  %v1944_v29 = vrot.slane %v1942_v44, 4  ;;  %v1970_v46 = vshrl.u32 %v2915_v42, 16  ;;  %v2936_v52 = vcombine.high %v1898_v34, %v1926_v47  ;;  %v2003_v31 = vrot.slane %v2001_v43, 5 }
  0xb2   : > { %3266 = vmatpush3.bf16.msra.mxu0 %v3510_v51  ;;  %v2935_v51 = vcombine.low %v1898_v34, %v1926_v47  ;;  %v1990_v44 = vor.u32 %v1989_v12, %v1986_v37  ;;  %v2054_v17 = vshrl.u32 %v2927_v2, 16 }
  0xb3   : > { %3267 = vmatprep.subr.bf16.mxu0 %v3512_v53  ;;  %1837 = vmatmul.mubr.bf16.gmra.mrb[44].mxu1 %v2869_v49  ;;  %v1907_v53 = vrot.slane %v1906_v39, 4  ;;  %v1953_v49 = vrot.slane %v1951_v41, 5  ;;  %v1948_v63 = vor.u32 %v1947_v54, %v1944_v29  ;;  %v2009_v39 = vrot.slane %v2007_v30, 5 }
  0xb4   : > { %3306 = vmatpush3.bf16.msra.mxu1 %v3511_v45  ;;  %v1935_v45 = vrot.slane %v1934_v48, 4  ;;  %2462 = vmatprep.mubr.bf16.mxu0 %v2936_v52  ;;  %v2026_v48 = vshrl.u32 %v2923_v20, 16  ;;  %v1991_v29 = vrot.slane %v1990_v44, 4  ;;  %v2031_v54 = vrot.slane %v2029_v50, 5  ;;  %v2934_v20 = vld [vmem:[%s3758_s26 + $0x118] sm:$0x11] }
  0xb5   : > { %3307 = vmatprep.subr.bf16.mxu1 %v3513_v57  ;;  %v1972_v57 = vrot.slane %v1970_v46, 4  ;;  %v1912_v61 = vsel %vm3786_vm2, %v1907_v53, %v1911_v26  ;;  %v1949_v15 = vrot.slane %v1948_v63, 4  ;;  %v2035_v46 = vshll.u32 %v2925_v28, 16 }
  0xb6   : > { %3268 = vmatpush3.bf16.msra.mxu0 %v3514_v60  ;;  %v1973_v60 = vshll.u32 %v2915_v42, 16  ;;  %v1940_v3 = vsel %vm3786_vm2, %v1935_v45, %v1939_v38  ;;  %v2000_v42 = vrot.slane %v1998_v7, 4  ;;  %v2028_v53 = vrot.slane %v2026_v48, 4 }
  0xb7   : > { %v2937_v11 = vcombine.low %v1912_v61, %v1940_v3  ;;  %v2938_v14 = vcombine.high %v1912_v61, %v1940_v3  ;;  %v1954_v22 = vsel %vm3786_vm2, %v1949_v15, %v1953_v49  ;;  %v2021_v45 = vshll.u32 %v2922_v40, 16 }
  0xb8   : > { %3308 = vmatpush3.bf16.msra.mxu1 %v3515_v32  ;;  %v1975_v4 = vrot.slane %v1973_v60, 5  ;;  %v1961_v32 = vrot.slane %v1959_v9, 5  ;;  %v2004_v47 = vor.u32 %v2003_v31, %v2000_v42  ;;  %v1996_v49 = vsel %vm3786_vm2, %v1991_v29, %v1995_v35  ;;  %v2926_v60 = vld [vmem:[%s3758_s26 + $0xd8] sm:$0x11] }
  0xb9   : > { %2463 = vmatmul.mubr.bf16.vlgmr.msra.gmra.mrb[48].mxu0 %v2935_v51  ;;  %2527 = vmatprep.mubr.bf16.mxu1 %v2938_v14  ;;  %v2015_v51 = vshll.u32 %v2920_v36, 16  ;;  %v2014_v61 = vrot.slane %v2012_v56, 4  ;;  %v2032_v5 = vor.u32 %v2031_v54, %v2028_v53  ;;  %v2023_v10 = vrot.slane %v2021_v45, 5 }
  0xba   : > { %v1976_v18 = vor.u32 %v1975_v4, %v1972_v57  ;;  %v1962_v24 = vor.u32 %v1961_v32, %v1958_v19  ;;  %v2005_v52 = vrot.slane %v2004_v47, 4  ;;  %v2037_v57 = vrot.slane %v2035_v46, 5  ;;  %v2928_v19 = vld [vmem:[%s3758_s26 + $0xe8] sm:$0xff] }
  0xbb   : > { %2528 = vmatmul.mubr.bf16.vlgmr.msra.gmra.mrb[48].mxu1 %v2937_v11  ;;  %v2017_v63 = vrot.slane %v2015_v51, 5  ;;  %v2040_v11 = vshrl.u32 %v2924_v55, 16  ;;  %v2043_v14 = vshll.u32 %v2924_v55, 16  ;;  %v2033_v15 = vrot.slane %v2032_v5, 4 }
  0xbc   : > { %v1977_v33 = vrot.slane %v1976_v18, 4  ;;  %v1963_v26 = vrot.slane %v1962_v24, 4  ;;  %v2010_v4 = vsel %vm3786_vm2, %v2005_v52, %v2009_v39  ;;  %v2057_v18 = vshll.u32 %v2927_v2, 16  ;;  %v2930_v24 = vld [vmem:[%s3758_s26 + $0xf8] sm:$0x11] }
  0xbd   : > { %v2018_v9 = vor.u32 %v2017_v63, %v2014_v61  ;;  %v2045_v8 = vrot.slane %v2043_v14, 5  ;;  %v2038_v27 = vsel %vm3786_vm2, %v2033_v15, %v2037_v57  ;;  %v2056_v13 = vrot.slane %v2054_v17, 4 }
  0xbe   : > { %v1982_v25 = vsel %vm3786_vm2, %v1977_v33, %v1981_v16  ;;  %v1968_v41 = vsel %vm3786_vm2, %v1963_v26, %v1967_v21  ;;  %v2049_v16 = vshll.u32 %v2926_v60, 16  ;;  %v2042_v21 = vrot.slane %v2040_v11, 4 }
  0xbf   : > { %v2940_v38 = vcombine.high %v1954_v22, %v1982_v25  ;;  %v2939_v34 = vcombine.low %v1954_v22, %v1982_v25  ;;  %v2942_v58 = vcombine.high %v1968_v41, %v1996_v49  ;;  %v2941_v3 = vcombine.low %v1968_v41, %v1996_v49  ;;  %v2933_v22 = vld [vmem:[%s3758_s26 + $0x110] sm:$0x11] }
  0xc0   : > { %v2019_v32 = vrot.slane %v2018_v9, 4  ;;  %v2059_v33 = vrot.slane %v2057_v18, 5  ;;  %v2102_v7 = vor.u32 %v3992_v1, %v3986_v62  ;;  %v2944_v43 = vcombine.high %v2010_v4, %v2038_v27 }
  0xc1   : > { %2470 = vmatprep.mubr.bf16.mxu0 %v2940_v38  ;;  %2535 = vmatprep.mubr.bf16.mxu1 %v2942_v58  ;;  %v2046_v37 = vor.u32 %v2045_v8, %v2042_v21  ;;  %v2051_v12 = vrot.slane %v2049_v16, 5  ;;  %v2943_v35 = vcombine.low %v2010_v4, %v2038_v27  ;;  %v2065_v25 = vrot.slane %v2063_v23, 5 }
  0xc2   : > { %2471 = vmatmul.mubr.bf16.gmra.mrb[52].mxu0 %v2939_v34  ;;  %v2060_v30 = vor.u32 %v2059_v33, %v2056_v13  ;;  %v2091_v26 = vshll.u32 %v2933_v22, 16  ;;  %v2068_v28 = vshrl.u32 %v2928_v19, 16  ;;  %v2024_v42 = vsel %vm3786_vm2, %v2019_v32, %v2023_v10 }
  0xc3   : > { %2536 = vmatmul.mubr.bf16.gmra.mrb[52].mxu1 %v2941_v3  ;;  %2478 = vmatprep.mubr.bf16.mxu0 %v2944_v43  ;;  %v2047_v31 = vrot.slane %v2046_v37, 4  ;;  %v2071_v36 = vshll.u32 %v2928_v19, 16  ;;  %v2077_v38 = vshll.u32 %v2930_v24, 16  ;;  %v2105_v1 = vshll.u32 %v2934_v20, 16 }
  0xc4   : > { %v2061_v44 = vrot.slane %v2060_v30, 4  ;;  %v2093_v34 = vrot.slane %v2091_v26, 5  ;;  %v2070_v62 = vrot.slane %v2068_v28, 4  ;;  %v2103_v41 = vrot.slane %v2102_v7, 4 }
  0xc5   : > { %v2052_v39 = vsel %vm3786_vm2, %v2047_v31, %v2051_v12  ;;  %v2073_v40 = vrot.slane %v2071_v36, 5  ;;  %v2079_v51 = vrot.slane %v2077_v38, 5  ;;  %v2107_v52 = vrot.slane %v2105_v1, 5 }
  0xc6   : > { %v2946_v47 = vcombine.high %v2024_v42, %v2052_v39  ;;  %v2945_v48 = vcombine.low %v2024_v42, %v2052_v39  ;;  %v2066_v50 = vsel %vm3786_vm2, %v2061_v44, %v2065_v25  ;;  %v2094_v29 = vsel %vm3786_vm2, %v3990_v0, %v2093_v34 }
  0xc7   : > { %v2948_v46 = vcombine.high %v2066_v50, %v2094_v29  ;;  %v2074_v56 = vor.u32 %v2073_v40, %v2070_v62  ;;  %v2947_v53 = vcombine.low %v2066_v50, %v2094_v29  ;;  %v2108_v55 = vsel %vm3786_vm2, %v2103_v41, %v2107_v52 }
  0xc8   : > { %2543 = vmatprep.mubr.bf16.mxu1 %v2946_v47 }
  0xc9   : > { %v2075_v54 = vrot.slane %v2074_v56, 4 }
  0xca   : > { %2479 = vmatmul.mubr.bf16.gmra.mrb[56].mxu0 %v2943_v35 }
  0xcb   : > { %2544 = vmatmul.mubr.bf16.gmra.mrb[56].mxu1 %v2945_v48  ;;  %2486 = vmatprep.mubr.bf16.mxu0 %v2948_v46  ;;  %v2080_v45 = vsel %vm3786_vm2, %v2075_v54, %v2079_v51 }
  0xcc   : > { %v2950_v49 = vcombine.high %v2080_v45, %v2108_v55  ;;  %v2949_v57 = vcombine.low %v2080_v45, %v2108_v55 }
  0xce   : > { %2551 = vmatprep.mubr.bf16.mxu1 %v2950_v49 }
  0xd2   : > { %2487 = vmatmul.mubr.bf16.gmra.mrb[60].mxu0 %v2947_v53 }
  0xd3   : > { %2552 = vmatmul.mubr.bf16.gmra.mrb[60].mxu1 %v2949_v57 }
 0x129   : > { %v3029_v0 = vpop.f32.mrb[0].mxu0 }
 0x12a   : > { %v3030_v60 = vpop.f32.mrb[1].mxu0  ;;  %v3069_v2 = vpop.f32.mrb[0].mxu1 }
 0x12b   : > { %v3031_v61 = vadd.f32 %v3030_v60, %v3029_v0  ;;  %v3032_v63 = vpop.f32.mrb[2].mxu0  ;;  %v3070_v3 = vpop.f32.mrb[1].mxu1 }
 0x12c   : > { %v3033_v58 = vpop.f32.mrb[3].mxu0  ;;  %v3071_v5 = vadd.f32 %v3070_v3, %v3069_v2  ;;  %v3072_v6 = vpop.f32.mrb[2].mxu1 }
 0x12d   : > { %v3034_v4 = vadd.f32 %v3033_v58, %v3032_v63  ;;  %v3073_v9 = vpop.f32.mrb[3].mxu1 }
 0x12e   : > { %v929_v10 = vadd.f32 %v3071_v5, %v3031_v61  ;;  %v3074_v11 = vadd.f32 %v3073_v9, %v3072_v6 }
 0x130   : > { %v932_v59 = vadd.f32 %v3074_v11, %v3034_v4 }
 0x131   : > { %v3035_v14 = vpop.f32.mrb[4].mxu0 }
 0x132   : > { %v3036_v15 = vpop.f32.mrb[5].mxu0  ;;  %v3075_v19 = vpop.f32.mrb[4].mxu1 }
 0x133   : > { %v3037_v16 = vadd.f32 %v3036_v15, %v3035_v14  ;;  %v3038_v17 = vpop.f32.mrb[6].mxu0  ;;  %v3076_v21 = vpop.f32.mrb[5].mxu1 }
 0x134   : > { %v3039_v18 = vpop.f32.mrb[7].mxu0  ;;  %v3077_v8 = vadd.f32 %v3076_v21, %v3075_v19  ;;  %v3078_v22 = vpop.f32.mrb[6].mxu1 }
 0x135   : > { %v3040_v32 = vadd.f32 %v3039_v18, %v3038_v17  ;;  %v3079_v23 = vpop.f32.mrb[7].mxu1 }
 0x136   : > { %v937_v27 = vadd.f32 %v3077_v8, %v3037_v16  ;;  %v3080_v13 = vadd.f32 %v3079_v23, %v3078_v22 }
 0x138   : > { %v940_v33 = vadd.f32 %v3080_v13, %v3040_v32 }
 0x139   : > { %v3041_v24 = vpop.f32.mrb[8].mxu0 }
 0x13a   : > { %v3042_v7 = vpop.f32.mrb[9].mxu0 }
 0x13b   : > { %v3043_v43 = vadd.f32 %v3042_v7, %v3041_v24  ;;  %v3044_v37 = vpop.f32.mrb[10].mxu0 }
 0x13c   : > { %v3045_v12 = vpop.f32.mrb[11].mxu0  ;;  %v3081_v35 = vpop.f32.mrb[8].mxu1 }
 0x13d   : > { %v3046_v20 = vadd.f32 %v3045_v12, %v3044_v37  ;;  %v3082_v30 = vpop.f32.mrb[9].mxu1 }
 0x13e   : > { %v3083_v25 = vadd.f32 %v3082_v30, %v3081_v35  ;;  %v3084_v26 = vpop.f32.mrb[10].mxu1 }
 0x13f   : > { %v3085_v28 = vpop.f32.mrb[11].mxu1 }
 0x140   : > { %v945_v42 = vadd.f32 %v3083_v25, %v3043_v43  ;;  %v3086_v31 = vadd.f32 %v3085_v28, %v3084_v26 }
 0x142   : > { %v948_v36 = vadd.f32 %v3086_v31, %v3046_v20 }
 0x144   : > { %v3047_v38 = vpop.f32.mrb[12].mxu0 }
 0x145   : > { %v3048_v44 = vpop.f32.mrb[13].mxu0 }
 0x146   : > { %v3049_v34 = vadd.f32 %v3048_v44, %v3047_v38  ;;  %v3050_v62 = vpop.f32.mrb[14].mxu0  ;;  %v3087_v39 = vpop.f32.mrb[12].mxu1 }
 0x147   : > { %v3051_v1 = vpop.f32.mrb[15].mxu0  ;;  %v3088_v41 = vpop.f32.mrb[13].mxu1 }
 0x148   : > { %v3052_v40 = vadd.f32 %v3051_v1, %v3050_v62  ;;  %v3089_v47 = vadd.f32 %v3088_v41, %v3087_v39  ;;  %v3090_v48 = vpop.f32.mrb[14].mxu1 }
 0x149   : > { %v3091_v50 = vpop.f32.mrb[15].mxu1 }
 0x14a   : > { %v953_v29 = vadd.f32 %v3089_v47, %v3049_v34  ;;  %v3092_v46 = vadd.f32 %v3091_v50, %v3090_v48 }
 0x14c   : > { %v3109_v56 = vpop.f32.mrb[16].mxu0  ;;  %v956_v52 = vadd.f32 %v3092_v46, %v3052_v40 }
 0x14d   : > { %v3110_v51 = vpop.f32.mrb[17].mxu0 }
 0x14e   : > { %v3111_v53 = vadd.f32 %v3110_v51, %v3109_v56  ;;  %v3112_v54 = vpop.f32.mrb[18].mxu0  ;;  %v3149_v45 = vpop.f32.mrb[16].mxu1 }
 0x14f   : > { %v3113_v55 = vpop.f32.mrb[19].mxu0  ;;  %v3150_v0 = vpop.f32.mrb[17].mxu1 }
 0x150   : > { %v1266_v49 = vadd.f32 %v3111_v53, %v929_v10  ;;  %v3114_v57 = vadd.f32 %v3113_v55, %v3112_v54  ;;  %v3151_v60 = vadd.f32 %v3150_v0, %v3149_v45  ;;  %v3152_v61 = vpop.f32.mrb[18].mxu1 }
 0x151   : > { %v3153_v2 = vpop.f32.mrb[19].mxu1 }
 0x152   : > { %v1269_v63 = vadd.f32 %v3114_v57, %v932_v59  ;;  %v4057_v58 = vadd.f32 %v3151_v60, %v1266_v49  ;;  %v3154_v3 = vadd.f32 %v3153_v2, %v3152_v61 }
 0x154   : > { %v3115_v4 = vpop.f32.mrb[20].mxu0  ;;  %v4059_v6 = vadd.f32 %v3154_v3, %v1269_v63 }
 0x155   : > { %v3116_v5 = vpop.f32.mrb[21].mxu0 }
 0x156   : > { %v3117_v9 = vadd.f32 %v3116_v5, %v3115_v4  ;;  %v3118_v11 = vpop.f32.mrb[22].mxu0  ;;  %v3155_v15 = vpop.f32.mrb[20].mxu1 }
 0x157   : > { %v3119_v14 = vpop.f32.mrb[23].mxu0  ;;  %v3156_v10 = vpop.f32.mrb[21].mxu1 }
 0x158   : > { %v1274_v16 = vadd.f32 %v3117_v9, %v937_v27  ;;  %v3120_v17 = vadd.f32 %v3119_v14, %v3118_v11  ;;  %v3157_v18 = vadd.f32 %v3156_v10, %v3155_v15  ;;  %v3158_v19 = vpop.f32.mrb[22].mxu1 }
 0x159   : > { %v3159_v21 = vpop.f32.mrb[23].mxu1 }
 0x15a   : > { %v1277_v32 = vadd.f32 %v3120_v17, %v940_v33  ;;  %v4061_v59 = vadd.f32 %v3157_v18, %v1274_v16  ;;  %v3160_v8 = vadd.f32 %v3159_v21, %v3158_v19 }
 0x15c   : > { %v3121_v22 = vpop.f32.mrb[24].mxu0  ;;  %v4063_v13 = vadd.f32 %v3160_v8, %v1277_v32 }
 0x15d   : > { %v3122_v23 = vpop.f32.mrb[25].mxu0 }
 0x15e   : > { %v3123_v24 = vadd.f32 %v3122_v23, %v3121_v22  ;;  %v3124_v7 = vpop.f32.mrb[26].mxu0  ;;  %v3161_v37 = vpop.f32.mrb[24].mxu1 }
 0x15f   : > { %v3125_v43 = vpop.f32.mrb[27].mxu0  ;;  %v3162_v27 = vpop.f32.mrb[25].mxu1 }
 0x160   : > { %v1282_v12 = vadd.f32 %v3123_v24, %v945_v42  ;;  %v3126_v35 = vadd.f32 %v3125_v43, %v3124_v7  ;;  %v3163_v20 = vadd.f32 %v3162_v27, %v3161_v37  ;;  %v3164_v30 = vpop.f32.mrb[26].mxu1 }
 0x161   : > { %v3165_v26 = vpop.f32.mrb[27].mxu1 }
 0x162   : > { %v1285_v25 = vadd.f32 %v3126_v35, %v948_v36  ;;  %v4065_v33 = vadd.f32 %v3163_v20, %v1282_v12  ;;  %v3166_v28 = vadd.f32 %v3165_v26, %v3164_v30 }
 0x164   : > { %v3127_v31 = vpop.f32.mrb[28].mxu0  ;;  %v4067_v44 = vadd.f32 %v3166_v28, %v1285_v25 }
 0x165   : > { %v3128_v38 = vpop.f32.mrb[29].mxu0 }
 0x166   : > { %v3129_v34 = vadd.f32 %v3128_v38, %v3127_v31  ;;  %v3130_v62 = vpop.f32.mrb[30].mxu0  ;;  %v3167_v39 = vpop.f32.mrb[28].mxu1 }
 0x167   : > { %v3131_v1 = vpop.f32.mrb[31].mxu0  ;;  %v3168_v42 = vpop.f32.mrb[29].mxu1 }
 0x168   : > { %v1290_v40 = vadd.f32 %v3129_v34, %v953_v29  ;;  %v3132_v41 = vadd.f32 %v3131_v1, %v3130_v62  ;;  %v3169_v47 = vadd.f32 %v3168_v42, %v3167_v39  ;;  %v3170_v48 = vpop.f32.mrb[30].mxu1 }
 0x169   : > { %v3171_v46 = vpop.f32.mrb[31].mxu1 }
 0x16a   : > { %v1293_v50 = vadd.f32 %v3132_v41, %v956_v52  ;;  %v4069_v36 = vadd.f32 %v3169_v47, %v1290_v40  ;;  %v3172_v56 = vadd.f32 %v3171_v46, %v3170_v48 }
 0x16c   : > { %v3189_v51 = vpop.f32.mrb[32].mxu0  ;;  %v1358_v54 = vadd.f32 %v3172_v56, %v1293_v50 }
 0x16d   : > { %v3190_v53 = vpop.f32.mrb[33].mxu0 }
 0x16e   : > { %v3191_v55 = vadd.f32 %v3190_v53, %v3189_v51  ;;  %v3192_v45 = vpop.f32.mrb[34].mxu0  ;;  %v3229_v57 = vpop.f32.mrb[32].mxu1 }
 0x16f   : > { %v3193_v49 = vpop.f32.mrb[35].mxu0  ;;  %v3230_v60 = vpop.f32.mrb[33].mxu1 }
 0x170   : > { %v3194_v0 = vadd.f32 %v3193_v49, %v3192_v45  ;;  %v3231_v61 = vadd.f32 %v3230_v60, %v3229_v57  ;;  %v3232_v29 = vpop.f32.mrb[34].mxu1 }
 0x171   : > { %v3233_v63 = vpop.f32.mrb[35].mxu1 }
 0x172   : > { %v1815_v2 = vadd.f32 %v3231_v61, %v3191_v55  ;;  %v3234_v3 = vadd.f32 %v3233_v63, %v3232_v29 }
 0x174   : > { %v3195_v4 = vpop.f32.mrb[36].mxu0  ;;  %v4072_v5 = vadd.f32 %v1815_v2, %v4057_v58  ;;  %v1818_v9 = vadd.f32 %v3234_v3, %v3194_v0 }
 0x175   : > { %v3196_v52 = vpop.f32.mrb[37].mxu0 }
 0x176   : > { %v3197_v11 = vadd.f32 %v3196_v52, %v3195_v4  ;;  %v3198_v14 = vpop.f32.mrb[38].mxu0  ;;  %v4075_v16 = vadd.f32 %v1818_v9, %v4059_v6  ;;  %v3235_v17 = vpop.f32.mrb[36].mxu1 }
 0x177   : > { %v3199_v15 = vpop.f32.mrb[39].mxu0  ;;  %v3236_v18 = vpop.f32.mrb[37].mxu1 }
 0x178   : > { %v3200_v10 = vadd.f32 %v3199_v15, %v3198_v14  ;;  %v3237_v19 = vadd.f32 %v3236_v18, %v3235_v17  ;;  %v3238_v32 = vpop.f32.mrb[38].mxu1 }
 0x179   : > { %v3239_v21 = vpop.f32.mrb[39].mxu1 }
 0x17a   : > { %v1823_v8 = vadd.f32 %v3237_v19, %v3197_v11  ;;  %v3240_v22 = vadd.f32 %v3239_v21, %v3238_v32 }
 0x17c   : > { %v3201_v23 = vpop.f32.mrb[40].mxu0  ;;  %v4078_v58 = vadd.f32 %v1823_v8, %v4061_v59  ;;  %v1826_v7 = vadd.f32 %v3240_v22, %v3200_v10 }
 0x17d   : > { %v3202_v24 = vpop.f32.mrb[41].mxu0 }
 0x17e   : > { %v3203_v43 = vadd.f32 %v3202_v24, %v3201_v23  ;;  %v3204_v37 = vpop.f32.mrb[42].mxu0  ;;  %v4081_v6 = vadd.f32 %v1826_v7, %v4063_v13  ;;  %v3241_v35 = vpop.f32.mrb[40].mxu1 }
 0x17f   : > { %v3205_v12 = vpop.f32.mrb[43].mxu0  ;;  %v3242_v20 = vpop.f32.mrb[41].mxu1 }
 0x180   : > { %v3206_v27 = vadd.f32 %v3205_v12, %v3204_v37  ;;  %v3243_v30 = vadd.f32 %v3242_v20, %v3241_v35  ;;  %v3244_v25 = vpop.f32.mrb[42].mxu1 }
 0x181   : > { %v3245_v26 = vpop.f32.mrb[43].mxu1 }
 0x182   : > { %v1831_v28 = vadd.f32 %v3243_v30, %v3203_v43  ;;  %v3246_v31 = vadd.f32 %v3245_v26, %v3244_v25 }
 0x184   : > { %v3207_v38 = vpop.f32.mrb[44].mxu0  ;;  %v4084_v59 = vadd.f32 %v1831_v28, %v4065_v33  ;;  %v1834_v62 = vadd.f32 %v3246_v31, %v3206_v27 }
 0x185   : > { %v3208_v34 = vpop.f32.mrb[45].mxu0 }
 0x186   : > { %v3209_v1 = vadd.f32 %v3208_v34, %v3207_v38  ;;  %v3210_v39 = vpop.f32.mrb[46].mxu0  ;;  %v4087_v13 = vadd.f32 %v1834_v62, %v4067_v44  ;;  %v3247_v41 = vpop.f32.mrb[44].mxu1 }
 0x187   : > { %v3211_v40 = vpop.f32.mrb[47].mxu0  ;;  %v3248_v47 = vpop.f32.mrb[45].mxu1 }
 0x188   : > { %v3212_v42 = vadd.f32 %v3211_v40, %v3210_v39  ;;  %v3249_v48 = vadd.f32 %v3248_v47, %v3247_v41  ;;  %v3250_v50 = vpop.f32.mrb[46].mxu1 }
 0x189   : > { %v3251_v46 = vpop.f32.mrb[47].mxu1 }
 0x18a   : > { %v1839_v56 = vadd.f32 %v3249_v48, %v3209_v1  ;;  %v3252_v51 = vadd.f32 %v3251_v46, %v3250_v50 }
 0x18c   : > { %v4090_v53 = vadd.f32 %v1839_v56, %v4069_v36  ;;  %v1842_v33 = vadd.f32 %v3252_v51, %v3212_v42  ;;  %v3269_v45 = vpop.f32.mrb[48].mxu0  ;;  %v4097_v36 = vld [vmem:[%s4194_s2] ss:$0 sm:$0xff] }
 0x18d   : > { %v3270_v49 = vpop.f32.mrb[49].mxu0 }
 0x18e   : > { %v4092_v55 = vadd.f32 %v1842_v33, %v1358_v54  ;;  %v3271_v57 = vadd.f32 %v3270_v49, %v3269_v45  ;;  %v3272_v0 = vpop.f32.mrb[50].mxu0  ;;  %v3309_v60 = vpop.f32.mrb[48].mxu1 }
 0x18f   : > { %v3273_v44 = vpop.f32.mrb[51].mxu0  ;;  %v3310_v29 = vpop.f32.mrb[49].mxu1 }
 0x190   : > { %v3274_v61 = vadd.f32 %v3273_v44, %v3272_v0  ;;  %v3311_v63 = vadd.f32 %v3310_v29, %v3309_v60  ;;  %v3312_v2 = vpop.f32.mrb[50].mxu1 }
 0x191   : > { %v3313_v3 = vpop.f32.mrb[51].mxu1 }
 0x192   : > { %v2530_v4 = vadd.f32 %v3311_v63, %v3271_v57  ;;  %v3314_v52 = vadd.f32 %v3313_v3, %v3312_v2 }
 0x194   : > { %v2560_v54 = vadd.f32 %v2530_v4, %v4072_v5  ;;  %v2533_v9 = vadd.f32 %v3314_v52, %v3274_v61 }
 0x195   : > { %v3275_v11 = vpop.f32.mrb[52].mxu0 }
 0x196   : > { %v3276_v14 = vpop.f32.mrb[53].mxu0  ;;  %v4101_v15 = vadd.f32 %v4097_v36, %v2560_v54  ;;  %v2561_v17 = vadd.f32 %v2533_v9, %v4075_v16  ;;  %v3315_v22 = vpop.f32.mrb[52].mxu1 }
 0x197   : > { %v3277_v10 = vadd.f32 %v3276_v14, %v3275_v11  ;;  %v3278_v18 = vpop.f32.mrb[54].mxu0  ;;  %v3316_v24 = vpop.f32.mrb[53].mxu1 }
 0x198   : > { %v3279_v19 = vpop.f32.mrb[55].mxu0  ;;  %v2583_v32 = vsub.f32 0.0, %v4101_v15  ;;  %v4106_v21 = vadd.f32 %v4097_v36, %v2561_v17  ;;  %v3317_v7 = vadd.f32 %v3316_v24, %v3315_v22  ;;  %v3318_v43 = vpop.f32.mrb[54].mxu1 }
 0x199   : > { %v3280_v8 = vadd.f32 %v3279_v19, %v3278_v18  ;;  %v3319_v12 = vpop.f32.mrb[55].mxu1 }
 0x19a   : > { %v2591_v23 = vmul.f32 1.442695, %v2583_v32  ;;  %v2584_v5 = vsub.f32 0.0, %v4106_v21  ;;  %v2538_v16 = vadd.f32 %v3317_v7, %v3277_v10  ;;  %v3320_v35 = vadd.f32 %v3319_v12, %v3318_v43 }
 0x19c   : > { %3516 = vpow2.f32 %v2591_v23  ;;  %v2593_v37 = vmul.f32 1.442695, %v2584_v5  ;;  %v2562_v20 = vadd.f32 %v2538_v16, %v4078_v58  ;;  %v2541_v30 = vadd.f32 %v3320_v35, %v3280_v8 }
 0x19d   : > { %v3281_v27 = vpop.f32.mrb[56].mxu0 }
 0x19e   : > { %3518 = vpow2.f32 %v2593_v37  ;;  %v3282_v25 = vpop.f32.mrb[57].mxu0  ;;  %v4111_v31 = vadd.f32 %v4097_v36, %v2562_v20  ;;  %v2563_v38 = vadd.f32 %v2541_v30, %v4081_v6  ;;  %v3321_v40 = vpop.f32.mrb[56].mxu1 }
 0x19f   : > { %v3283_v26 = vadd.f32 %v3282_v25, %v3281_v27  ;;  %v3284_v28 = vpop.f32.mrb[58].mxu0  ;;  %v3322_v41 = vpop.f32.mrb[57].mxu1 }
 0x1a0   : > { %v3285_v34 = vpop.f32.mrb[59].mxu0  ;;  %v2585_v1 = vsub.f32 0.0, %v4111_v31  ;;  %v4116_v39 = vadd.f32 %v4097_v36, %v2563_v38  ;;  %v3323_v47 = vadd.f32 %v3322_v41, %v3321_v40  ;;  %v3324_v48 = vpop.f32.mrb[58].mxu1 }
 0x1a1   : > { %v3286_v62 = vadd.f32 %v3285_v34, %v3284_v28  ;;  %v3325_v46 = vpop.f32.mrb[59].mxu1 }
 0x1a2   : > { %v2595_v42 = vmul.f32 1.442695, %v2585_v1  ;;  %v2586_v58 = vsub.f32 0.0, %v4116_v39  ;;  %v2546_v33 = vadd.f32 %v3323_v47, %v3283_v26  ;;  %v3326_v57 = vadd.f32 %v3325_v46, %v3324_v48 }
 0x1a4   : > { %3520 = vpow2.f32 %v2595_v42  ;;  %v2597_v6 = vmul.f32 1.442695, %v2586_v58  ;;  %v2564_v61 = vadd.f32 %v2546_v33, %v4084_v59  ;;  %v2549_v63 = vadd.f32 %v3326_v57, %v3286_v62 }
 0x1a5   : > { %v3287_v56 = vpop.f32.mrb[60].mxu0 }
 0x1a6   : > { %v3517_v50 = vpop.eup %3516  ;;  %v3288_v45 = vpop.f32.mrb[61].mxu0  ;;  %v2579_v3 = vadd.f32 %v4097_v36, %v2564_v61  ;;  %v2565_v52 = vadd.f32 %v2549_v63, %v4087_v13 }
 0x1a7   : > { %v2607_v51 = vadd.f32 1.0, %v3517_v50  ;;  %v3289_v0 = vadd.f32 %v3288_v45, %v3287_v56  ;;  %v3290_v44 = vpop.f32.mrb[62].mxu0  ;;  %v3327_v4 = vpop.f32.mrb[60].mxu1 }
 0x1a8   : > { %v3519_v49 = vpop.eup %3518  ;;  %v3291_v29 = vpop.f32.mrb[63].mxu0  ;;  %v2587_v9 = vsub.f32 0.0, %v2579_v3  ;;  %v2580_v17 = vadd.f32 %v4097_v36, %v2565_v52 }
 0x1a9   : > { %3522 = vrcp.f32 %v2607_v51  ;;  %v2608_v60 = vadd.f32 1.0, %v3519_v49  ;;  %v3292_v2 = vadd.f32 %v3291_v29, %v3290_v44  ;;  %v3328_v54 = vpop.f32.mrb[61].mxu1 }
 0x1aa   : > { %3524 = vpow2.f32 %v2597_v6  ;;  %v3329_v11 = vadd.f32 %v3328_v54, %v3327_v4  ;;  %v3330_v14 = vpop.f32.mrb[62].mxu1  ;;  %v2599_v59 = vmul.f32 1.442695, %v2587_v9  ;;  %v2588_v32 = vsub.f32 0.0, %v2580_v17 }
 0x1ab   : > { %3526 = vrcp.f32 %v2608_v60  ;;  %v3331_v10 = vpop.f32.mrb[63].mxu1 }
 0x1ac   : > { %v2554_v18 = vadd.f32 %v3329_v11, %v3289_v0  ;;  %v3332_v19 = vadd.f32 %v3331_v10, %v3330_v14  ;;  %3528 = vpow2.f32 %v2599_v59  ;;  %v2601_v13 = vmul.f32 1.442695, %v2588_v32 }
 0x1ae   : > { %v3521_v8 = vpop.eup %3520  ;;  %v2566_v22 = vadd.f32 %v2554_v18, %v4090_v53  ;;  %v2557_v23 = vadd.f32 %v3332_v19, %v3292_v2 }
 0x1af   : > { %v2609_v5 = vadd.f32 1.0, %v3521_v8 }
 0x1b0   : > { %v2581_v7 = vadd.f32 %v4097_v36, %v2566_v22  ;;  %v2567_v43 = vadd.f32 %v2557_v23, %v4092_v55 }
 0x1b1   : > { %3530 = vrcp.f32 %v2609_v5 }
 0x1b2   : > { %3532 = vpow2.f32 %v2601_v13  ;;  %v2589_v35 = vsub.f32 0.0, %v2581_v7  ;;  %v2582_v27 = vadd.f32 %v4097_v36, %v2567_v43 }
 0x1b3   : > { %v3523_v24 = vpop.eup %3522 }
 0x1b4   : > { %v3525_v37 = vpop.eup %3524  ;;  %v2623_v53 = vmul.f32 %v3523_v24, %v4101_v15  ;;  %v2603_v30 = vmul.f32 1.442695, %v2589_v35  ;;  %v2590_v25 = vsub.f32 0.0, %v2582_v27 }
 0x1b5   : > { %v3527_v12 = vpop.eup %3526  ;;  %v2610_v16 = vadd.f32 1.0, %v3525_v37 }
 0x1b6   : > { %v2624_v20 = vmul.f32 %v3527_v12, %v4106_v21  ;;  %v2605_v55 = vmul.f32 1.442695, %v2590_v25  ;;  %v3529_v28 = vpop.eup %3528 }
 0x1b7   : > { %3534 = vrcp.f32 %v2610_v16  ;;  %v2611_v38 = vadd.f32 1.0, %v3529_v28 }
 0x1b8   : > { %v2993_v26 = vpack.c.bf16 %v2624_v20, %v2623_v53  ;;  %3536 = vpow2.f32 %v2603_v30 }
 0x1b9   : > { %3538 = vpow2.f32 %v2605_v55 }
 0x1ba   : > { %2994 = vst [vmem:[%s4132_s4] sm:$0xff] %v2993_v26   ;;  %3540 = vrcp.f32 %v2611_v38 }
 0x1bb   : > { %v3531_v34 = vpop.eup %3530 }
 0x1bc   : > { %v3533_v36 = vpop.eup %3532  ;;  %v2625_v21 = vmul.f32 %v3531_v34, %v4111_v31 }
 0x1bd   : > { %v2612_v15 = vadd.f32 1.0, %v3533_v36 }
 0x1bf   : > { %3542 = vrcp.f32 %v2612_v15 }
 0x1c1   : > { %v3535_v62 = vpop.eup %3534 }
 0x1c2   : > { %v2626_v1 = vmul.f32 %v3535_v62, %v4116_v39  ;;  %v3537_v40 = vpop.eup %3536 }
 0x1c3   : > { %v2613_v42 = vadd.f32 1.0, %v3537_v40  ;;  %v3539_v58 = vpop.eup %3538 }
 0x1c4   : > { %v2998_v41 = vpack.c.bf16 %v2626_v1, %v2625_v21  ;;  %v2614_v47 = vadd.f32 1.0, %v3539_v58  ;;  %v3541_v48 = vpop.eup %3540 }
 0x1c5   : > { %3544 = vrcp.f32 %v2613_v42  ;;  %v2627_v46 = vmul.f32 %v3541_v48, %v2579_v3 }
 0x1c6   : > { %3010 = vst [vmem:[%s4132_s4 + $0x8] sm:$0xff] %v2998_v41   ;;  %3546 = vrcp.f32 %v2614_v47 }
 0x1c9   : > { %v3543_v50 = vpop.eup %3542 }
 0x1ca   : > { %v2628_v31 = vmul.f32 %v3543_v50, %v2580_v17 }
 0x1cc   : > { %v3003_v39 = vpack.c.bf16 %v2628_v31, %v2627_v46 }
 0x1ce   : > { %3011 = vst [vmem:[%s4132_s4 + $0x10] sm:$0xff] %v3003_v39  }
 0x1cf   : > { %v3545_v56 = vpop.eup %3544 }
 0x1d0   : > { %v3547_v51 = vpop.eup %3546  ;;  %v2629_v6 = vmul.f32 %v3545_v56, %v2581_v7 }
 0x1d1   : > { %v2630_v33 = vmul.f32 %v3547_v51, %v2582_v27 }
 0x1d3   : > { %v3008_v45 = vpack.c.bf16 %v2630_v33, %v2629_v6 }
 0x1d5   : > { %3012 = vst [vmem:[%s4132_s4 + $0x18] sm:$0xff] %v3008_v45  }
 0x1d6   : > { %3589 = shalt.err (!%p3586_p7)
}
 0x1d7   : > { %s3590_s20 = scalar_lea.hbm %s4144_s9, 512  ;;  %s3594_s26 = scalar_lea.hbm %s4195_s3, 1024 }
 0x1d8   : > { %p3591_p8 = scmp.ne.s32.totalorder %s4144_s9, %s3590_s20  ;;  %p3595_p1 = scmp.lt.u32.totalorder %s4144_s9, %s4195_s3 }
 0x1d9   : > { %p3596_p0 = scmp.lt.u32.totalorder %s3594_s26, %s3590_s20  ;;  %p3598_p6 = scmp.lt.u32.totalorder %s3590_s20, %s4144_s9 }
 0x1da   : > { %p3592_p11 = pnand %p3591_p8, %p4208_p9 }
 0x1db   : > { %p3597_p5 = por %p3596_p0, %p3595_p1 }
 0x1dc   : > { %p3593_p13 = pneg %p3592_p11 }
 0x1dd   : > { %p3599_p10 = por %p3598_p6, %p3597_p5 }
 0x1df   : > { %p3600_p12 = pnand %p3599_p10, %p3593_p13 }
 0x1e1   : > { %3603 = shalt.err (!%p3600_p12)
}
 0x1e2   : > { %s3648_s29 = smov 64   ;;  %s3649_s30 = smov 4  }
 0x1e3   : > { %3338 = dma.vmem_to_hbm [thread:$0]  (%p4208_p9), %s4146_s6, 512, %s4144_s9, %s4151_s10, %s3648_s29, %s3648_s29, %s3649_s30  }
 0x1e4 PF: > { %p3350_p2 = scmp.ge.s32.totalorder %s3642_s15, 2  ;;  %s2676_s4 = sand.u32 1, %s3630_s12  }
 0x1e5   : > { %p4209_p3 = scmp.ne.s32.totalorder %s4200_s23, 0  ;;  %s2677_s5 = scalar_lea.sflag [#allocation4], %s2676_s4 }
 0x1e7   : > { %p3345_p4 = pnand %p3350_p2, %p4209_p3 }
 0x1e9   : > { %3625 = dma.done.wait (!%p3345_p4), %s2677_s5, 512  }
 0x1ea   : > { %3627 = vsyncadd (!%p3345_p4), %s2677_s5, 4294966784  ;;  %p14_p7 = scmp.ge.s32.totalorder %s3695_s18, 4   ;;  %s4210_s12 = smov %s3634_s13 }
 0x1eb   : > { %s4211_s13 = smov %s3638_s14  ;;  %s4212_s14 = smov %s3706_s21 }
 0x1ec   : > { %s4213_s15 = smov %s3695_s18  ;;  %16 = sbr.rel (!%p14_p7) target bundleno = 4 (0x4), region = 76 }
 0x1f3   :  { %2682 = vsyncpa [#allocation3], 1 }
 0x1f4   :  { %2684 = vsyncpa [#allocation3 + $0x1], 1 }
 0x1f5   :  { %2685 = vsyncpa [#allocation4], 1 }
 0x1f6   :  { %2687 = vsyncpa [#allocation4 + $0x1], 1 }

</bundles_post_ra>
